<compile_context>
chip_gen: v6e
topology: v6e:2x2x1
jax: 0.10.0
libtpu: 0.0.40
codegen_flags: <defaults>
</compile_context>

<pallas_src>
import math

import jax
import jax.numpy as jnp
from jax import lax
from jax.experimental import pallas as pl
from jax.experimental.pallas import tpu as pltpu

# ----------------------------- small config ---------------------------------
INPUT_SIZE = 12
OUTPUT_SIZE = 10
D_MODEL = 32
D_STATE = 16
D_CONV = 4
EXPAND = 2
NUM_LAYERS = 2
D_INNER = EXPAND * D_MODEL               # 64
DT_RANK = math.ceil(D_MODEL / 16)        # 2
BATCH = 16
SEQ = 1                                  # step path requires seqlen == 1
NSTEPS = 3                               # decode-loop demo length
LN_EPS = 1e-5
LANE = 128
TB = 8                                   # batch tile (>=2 grid steps at B>=16 for v7x megacore)

# ---- per-layer bf16 matmul slab (lane width 128) ----------------------------
M_WIN = 0                       # (D_MODEL, 2*D_INNER)          in_proj  [x | z]
M_WXP = M_WIN + D_MODEL         # (D_INNER, D_INNER+2*D_STATE)  x_proj   [dt(folded) | B | C]
M_WOUT = M_WXP + D_INNER        # (D_INNER, D_MODEL)            out_proj
MX_ROWS = M_WOUT + D_INNER      # 160

# ---- per-layer f32 elementwise slab (lane width = d_inner) -------------------
E_A = 0                         # (D_STATE, D_INNER)   A = -exp(A_log), transposed
E_CONVW = E_A + D_STATE         # (D_CONV, D_INNER)
E_CONVB = E_CONVW + D_CONV      # (1, D_INNER)
E_DTB = E_CONVB + 1             # (1, D_INNER)
E_D = E_DTB + 1                 # (1, D_INNER)
E_NW = E_D + 1                  # (1, D_MODEL padded to D_INNER)  block layernorm weight
E_NB = E_NW + 1                 # (1, D_MODEL padded)             block layernorm bias
EW_ROWS = ((E_NB + 1 + 7) // 8) * 8      # 32, 8-aligned

# ---- f32 head slab (lane width 128) ------------------------------------------
H_WO = 0                        # (D_MODEL, 128)  out proj, outputs in lanes 0..9
H_WI = H_WO + D_MODEL           # (INPUT_SIZE, 128) in proj, d_model in lanes 0..31
H_BI = H_WI + INPUT_SIZE        # (1, 128)
H_BO = H_BI + 1                 # (1, 128)
H_NFW = H_BO + 1                # (1, 128) final norm weight
H_NFB = H_NFW + 1               # (1, 128) final norm bias
HEAD_ROWS = H_NFB + 1           # 48


def _layernorm(x, w, b):
    mu = jnp.mean(x, axis=-1, keepdims=True)
    xc = x - mu
    var = jnp.mean(xc * xc, axis=-1, keepdims=True)
    return xc * lax.rsqrt(var + LN_EPS) * w + b


def _silu(x):
    return x * jax.nn.sigmoid(x)


# ------------------------------- kernel -------------------------------------
def _mamba_step_kernel(x_ref, conv_ref, ssm_ref, wmx_ref, wew_ref, head_ref,
                       out_ref, conv_out_ref, ssm_out_ref, h_sc, res_sc):
    l = pl.program_id(1)
    last = pl.num_programs(1) - 1

    # --- residual stream: init from input projection at layer 0, else accumulate h
    @pl.when(l == 0)
    def _():
        x = x_ref[...]                                               # (TB, input_size)
        wi = head_ref[H_WI:H_WI + INPUT_SIZE, :]                     # (in, 128) zero-padded
        bi = head_ref[H_BI:H_BI + 1, :]
        h0 = jnp.dot(x, wi, preferred_element_type=jnp.float32) + bi
        res_sc[...] = h0[:, :D_MODEL]

    @pl.when(l > 0)
    def _():
        res_sc[...] = res_sc[...] + h_sc[...]

    residual = res_sc[...]                                           # (TB, d_model)
    nrm_w = wew_ref[E_NW:E_NW + 1, :D_MODEL]
    nrm_b = wew_ref[E_NB:E_NB + 1, :D_MODEL]
    hn = _layernorm(residual, nrm_w, nrm_b)                          # (TB, d_model) f32

    # --- fused in_proj: one lane-dense (d_model x 128) bf16 matmul -> [xs | z]
    w_in = wmx_ref[M_WIN:M_WIN + D_MODEL, :]                         # bf16
    xz = jnp.dot(hn.astype(jnp.bfloat16), w_in,
                 preferred_element_type=jnp.float32)                 # (TB, 2*d_inner)
    xs = xz[:, :D_INNER]
    z = xz[:, D_INNER:]

    # --- conv cache roll + causal depthwise conv, (d_conv, TB, d_inner) layout (f32 VPU)
    conv_w = wew_ref[E_CONVW:E_CONVW + D_CONV, :]                    # (d_conv, d_inner)
    conv_b = wew_ref[E_CONVB:E_CONVB + 1, :]                         # (1, d_inner)
    conv = conv_ref[...]                                             # (d_conv, TB, d_inner)
    xc = conv_b + xs * conv_w[D_CONV - 1:D_CONV, :]
    for k in range(D_CONV - 1):
        xc = xc + conv[k + 1] * conv_w[k:k + 1, :]
    conv_out_ref[0:D_CONV - 1] = conv[1:]                            # contiguous full-lane store
    conv_out_ref[D_CONV - 1] = xs
    xc = _silu(xc)                                                   # (TB, d_inner)

    # --- fused x_proj + folded dt_proj: one (d_inner x 128) bf16 matmul -> [dt | B | C | pad]
    w_xp = wmx_ref[M_WXP:M_WXP + D_INNER, :]                         # bf16
    dt_b = wew_ref[E_DTB:E_DTB + 1, :]
    proj = jnp.dot(xc.astype(jnp.bfloat16), w_xp,
                   preferred_element_type=jnp.float32)               # (TB, 128)
    dt = jax.nn.softplus(proj[:, :D_INNER] + dt_b)                   # (TB, d_inner)
    Bm = proj[:, D_INNER:D_INNER + D_STATE]                          # (TB, d_state)
    Cm = proj[:, D_INNER + D_STATE:D_INNER + 2 * D_STATE]            # (TB, d_state)

    # --- selective SSM single step, (TB, d_state, d_inner) layout (d_inner on lanes, f32)
    A_t = wew_ref[E_A:E_A + D_STATE, :]                              # (d_state, d_inner) f32
    ssm = ssm_ref[...]                                               # (TB, d_state, d_inner)
    dA = jnp.exp(dt[:, None, :] * A_t[None, :, :])
    new_ssm = ssm * dA + (dt * xc)[:, None, :] * Bm[:, :, None]
    ssm_out_ref[...] = new_ssm
    y = jnp.sum(new_ssm * Cm[:, :, None], axis=1)                    # (TB, d_inner)
    d_par = wew_ref[E_D:E_D + 1, :]
    y = (y + d_par * xc) * _silu(z)

    # --- out_proj (bf16 MXU, f32 accum); carry block output for next layer
    w_out = wmx_ref[M_WOUT:M_WOUT + D_INNER, :]                      # bf16, (d_inner, 128) padded
    h = jnp.dot(y.astype(jnp.bfloat16), w_out,
                preferred_element_type=jnp.float32)[:, :D_MODEL]
    h_sc[...] = h

    # --- finalize: last residual add + norm_f + output projection, lane-dense (TB, 128) store
    @pl.when(l == last)
    def _():
        resf = h + res_sc[...]
        nfw = head_ref[H_NFW:H_NFW + 1, :D_MODEL]
        nfb = head_ref[H_NFB:H_NFB + 1, :D_MODEL]
        hf = _layernorm(resf, nfw, nfb)
        wo = head_ref[H_WO:H_WO + D_MODEL, :]                        # (d_model, 128)
        bo = head_ref[H_BO:H_BO + 1, :]
        out_ref[...] = jnp.dot(hf, wo, preferred_element_type=jnp.float32) + bo


# ------------------- native-layout entry (decode loops) ----------------------
def mamba_step_native(x2, conv_k, ssm_k, w_mx, w_ew, head):
    """x2: (B, in); conv_k: (L, d_conv, B, d_inner); ssm_k: (L, B, d_state, d_inner)."""
    B = x2.shape[0]
    assert B % TB == 0
    nb = B // TB
    grid = (nb, NUM_LAYERS)

    in_specs = [
        pl.BlockSpec((TB, INPUT_SIZE), lambda b, l: (b, 0)),                     # x
        pl.BlockSpec((None, D_CONV, TB, D_INNER), lambda b, l: (l, 0, b, 0)),    # conv cache
        pl.BlockSpec((None, TB, D_STATE, D_INNER), lambda b, l: (l, b, 0, 0)),   # ssm cache
        pl.BlockSpec((None, MX_ROWS, LANE), lambda b, l: (l, 0, 0)),             # bf16 matmul slab (per layer)
        pl.BlockSpec((None, EW_ROWS, D_INNER), lambda b, l: (l, 0, 0)),          # f32 elementwise slab
        pl.BlockSpec((HEAD_ROWS, LANE), lambda b, l: (0, 0)),                    # f32 head slab
    ]
    out_specs = [
        pl.BlockSpec((TB, LANE), lambda b, l: (b, 0)),                           # lane-dense output
        pl.BlockSpec((None, D_CONV, TB, D_INNER), lambda b, l: (l, 0, b, 0)),
        pl.BlockSpec((None, TB, D_STATE, D_INNER), lambda b, l: (l, b, 0, 0)),
    ]
    out_shape = (
        jax.ShapeDtypeStruct((B, LANE), jnp.float32),
        jax.ShapeDtypeStruct((NUM_LAYERS, D_CONV, B, D_INNER), jnp.float32),
        jax.ShapeDtypeStruct((NUM_LAYERS, B, D_STATE, D_INNER), jnp.float32),
    )
    out_pad, new_conv, new_ssm = pl.pallas_call(
        _mamba_step_kernel,
        grid=grid,
        in_specs=in_specs,
        out_specs=out_specs,
        out_shape=out_shape,
        scratch_shapes=[pltpu.VMEM((TB, D_MODEL), jnp.float32),   # h carry
                        pltpu.VMEM((TB, D_MODEL), jnp.float32)],  # residual carry
        input_output_aliases={1: 1, 2: 2},        # update conv/ssm caches in place
        compiler_params=pltpu.CompilerParams(
            dimension_semantics=("parallel", "arbitrary")),
    )(x2, conv_k, ssm_k, w_mx, w_ew, head)
    return out_pad[:, :OUTPUT_SIZE], new_conv, new_ssm


# jitted decode-step with donated caches (true in-place cache update)
mamba_step = jax.jit(mamba_step_native, donate_argnums=(1, 2))


# ------------- one-time layout conversion (decode-loop boundaries only) -------
def states_to_native(rnn_states):
    B = rnn_states.shape[1]
    st = rnn_states.reshape(NUM_LAYERS, B, D_INNER, D_CONV + D_STATE)
    conv_k = jnp.transpose(st[..., :D_CONV], (0, 3, 1, 2))     # (L, d_conv, B, d_inner)
    ssm_k = jnp.transpose(st[..., D_CONV:], (0, 1, 3, 2))      # (L, B, d_state, d_inner)
    return conv_k, ssm_k


def states_from_native(conv_k, ssm_k):
    B = conv_k.shape[2]
    conv = jnp.transpose(conv_k, (0, 2, 3, 1))                 # (L, B, d_inner, d_conv)
    ssm = jnp.transpose(ssm_k, (0, 1, 3, 2))                   # (L, B, d_inner, d_state)
    return jnp.concatenate([conv, ssm], axis=-1).reshape(NUM_LAYERS, B, -1)


# ------------------ PyTorch-layout compatibility wrapper ----------------------
@jax.jit
def custom_mamba_forward(x, rnn_states, packed):
    """Spec-faithful API. x: (SEQ=1, B, input_size); rnn_states: (L, B, d_inner*(d_conv+d_state))."""
    T, B, _ = x.shape
    assert T == 1
    conv_k, ssm_k = states_to_native(rnn_states)
    out, nc, ns = mamba_step_native(x[0], conv_k, ssm_k,
                                    packed['w_mx'], packed['w_ew'], packed['head'])
    return out[None], states_from_native(nc, ns)


# ------------------------- one-time parameter packing -------------------------
def pack_params(p):
    """Fold dt_proj into x_proj, precompute A=-exp(A_log), transpose to kernel-native layouts
    and pack: bf16 matmul slab + f32 elementwise slab (per layer) + f32 head slab."""
    def padl(a, lane=LANE):
        return jnp.pad(a, ((0, 0), (0, 0), (0, lane - a.shape[-1])))

    w_in = jnp.concatenate([p['w_in_x'], p['w_in_z']], axis=-1)           # (L, d_model, 2*d_inner)
    w_dtc = jnp.einsum('lir,lrj->lij', p['w_x_dt'], p['w_dt'])            # (L, d_inner, d_inner)
    w_xp = jnp.concatenate([w_dtc, p['w_x_b'], p['w_x_c']], axis=-1)      # (L, d_inner, d_inner+2*d_state)
    w_mx = jnp.concatenate([padl(w_in), padl(w_xp), padl(p['w_out'])],
                           axis=1).astype(jnp.bfloat16)                   # (L, 160, 128) bf16

    A_t = jnp.swapaxes(-jnp.exp(p['a_log']), 1, 2)                        # (L, d_state, d_inner)
    w_ew = jnp.concatenate(
        [A_t, p['conv_w'], p['conv_b'], p['dt_b'], p['D'],
         padl(p['norm_w'], D_INNER), padl(p['norm_b'], D_INNER)], axis=1)  # (L, 25, 64) f32
    w_ew = jnp.pad(w_ew, ((0, 0), (0, EW_ROWS - w_ew.shape[1]), (0, 0)))

    def padh(a, width):
        return jnp.pad(a, ((0, 0), (0, LANE - width)))
    head = jnp.concatenate(
        [padh(p['wo'], OUTPUT_SIZE), padh(p['wi'], D_MODEL), padh(p['bi'], D_MODEL),
         padh(p['bo'], OUTPUT_SIZE), padh(p['normf_w'], D_MODEL), padh(p['normf_b'], D_MODEL)],
        axis=0)                                                            # (48, 128) f32
    return dict(w_mx=w_mx, w_ew=w_ew, head=head)
    # TODO(synk): InferenceParams bookkeeping (key_value_memory_dict) is represented directly
    # as explicit state inputs/outputs; no Pallas equivalent needed.


# ----------------------- pure-JAX reference (sanity) --------------------------
def reference_forward(x, rnn_states, p):
    T, B, _ = x.shape
    states = rnn_states.reshape(NUM_LAYERS, B, D_INNER, D_CONV + D_STATE)
    conv_state = states[..., :D_CONV]
    ssm_state = states[..., D_CONV:]
    h = x[0] @ p['wi'] + p['bi']
    residual = None
    new_conv, new_ssm = [], []
    for l in range(NUM_LAYERS):
        residual = h if residual is None else h + residual
        hn = _layernorm(residual, p['norm_w'][l], p['norm_b'][l])
        xs = hn @ p['w_in_x'][l]
        z = hn @ p['w_in_z'][l]
        cs = jnp.concatenate([conv_state[l][..., 1:], xs[..., None]], axis=-1)
        new_conv.append(cs)
        xc = jnp.sum(cs * p['conv_w'][l].T[None], axis=-1) + p['conv_b'][l][0]
        xc = _silu(xc)
        dt = xc @ p['w_x_dt'][l]
        Bm = xc @ p['w_x_b'][l]
        Cm = xc @ p['w_x_c'][l]
        dt = jax.nn.softplus(dt @ p['w_dt'][l] + p['dt_b'][l][0])
        A = -jnp.exp(p['a_log'][l])
        dA = jnp.exp(dt[:, :, None] * A[None])
        dB = dt[:, :, None] * Bm[:, None, :]
        ns = ssm_state[l] * dA + xc[:, :, None] * dB
        new_ssm.append(ns)
        y = jnp.sum(ns * Cm[:, None, :], axis=-1) + p['D'][l][0] * xc
        y = y * _silu(z)
        h = y @ p['w_out'][l]
    residual = h + residual
    hf = _layernorm(residual, p['normf_w'], p['normf_b'])
    out = hf @ p['wo'] + p['bo']
    nc = jnp.stack(new_conv, 0)
    ns = jnp.stack(new_ssm, 0)
    new_rnn = jnp.concatenate([nc, ns], axis=-1).reshape(NUM_LAYERS, B, -1)
    return out[None], new_rnn


# ------------------------------ params init ----------------------------------
def init_params(key):
    ks = jax.random.split(key, 11)
    s = 0.1
    L = NUM_LAYERS
    a_row = jnp.log(jnp.arange(1, D_STATE + 1, dtype=jnp.float32))
    return dict(
        wi=s * jax.random.normal(ks[0], (INPUT_SIZE, D_MODEL), jnp.float32),
        bi=s * jax.random.normal(ks[1], (1, D_MODEL), jnp.float32),
        norm_w=jnp.ones((L, 1, D_MODEL), jnp.float32),
        norm_b=jnp.zeros((L, 1, D_MODEL), jnp.float32),
        w_in_x=s * jax.random.normal(ks[2], (L, D_MODEL, D_INNER), jnp.float32),
        w_in_z=s * jax.random.normal(ks[3], (L, D_MODEL, D_INNER), jnp.float32),
        conv_w=s * jax.random.normal(ks[4], (L, D_CONV, D_INNER), jnp.float32),
        conv_b=s * jax.random.normal(ks[5], (L, 1, D_INNER), jnp.float32),
        w_x_dt=s * jax.random.normal(ks[6], (L, D_INNER, DT_RANK), jnp.float32),
        w_x_b=s * jax.random.normal(ks[7], (L, D_INNER, D_STATE), jnp.float32),
        w_x_c=s * jax.random.normal(ks[8], (L, D_INNER, D_STATE), jnp.float32),
        w_dt=s * jax.random.normal(ks[9], (L, DT_RANK, D_INNER), jnp.float32),
        dt_b=s * jax.random.normal(ks[10], (L, 1, D_INNER), jnp.float32),
        a_log=jnp.tile(a_row[None, None, :], (L, D_INNER, 1)),
        D=jnp.ones((L, 1, D_INNER), jnp.float32),
        w_out=s * jax.random.normal(jax.random.PRNGKey(42), (L, D_INNER, D_MODEL), jnp.float32),
        normf_w=jnp.ones((1, D_MODEL), jnp.float32),
        normf_b=jnp.zeros((1, D_MODEL), jnp.float32),
        wo=s * jax.random.normal(jax.random.PRNGKey(43), (D_MODEL, OUTPUT_SIZE), jnp.float32),
        bo=s * jax.random.normal(jax.random.PRNGKey(44), (1, OUTPUT_SIZE), jnp.float32),
    )


if __name__ == "__main__":
    key = jax.random.PRNGKey(0)
    k1, k2, kp = jax.random.split(key, 3)
    xs_seq = jax.random.normal(k1, (NSTEPS, BATCH, INPUT_SIZE), jnp.float32)
    rnn0 = 0.1 * jax.random.normal(
        k2, (NUM_LAYERS, BATCH, D_INNER * (D_CONV + D_STATE)), jnp.float32)
    params = init_params(kp)
    packed = pack_params(params)              # one-time packing at parameter load

    # bf16 matmul weights shift accuracy slightly vs the pure-f32 reference; 5e-3 is ample.
    TOL = dict(atol=5e-3, rtol=5e-3)

    # ---- optimized decode loop: caches stay in native layout, donated every step ----
    conv_k, ssm_k = states_to_native(rnn0)
    outs = []
    for t in range(NSTEPS):
        out, conv_k, ssm_k = mamba_step(xs_seq[t], conv_k, ssm_k,
                                        packed['w_mx'], packed['w_ew'], packed['head'])
        outs.append(out)
    outs = jnp.stack(outs)
    final_states = states_from_native(conv_k, ssm_k)
    jax.block_until_ready((outs, final_states))

    # ---- reference decode loop (PyTorch layout) ----
    rnn = rnn0
    ref_outs = []
    for t in range(NSTEPS):
        y_ref, rnn = reference_forward(xs_seq[t][None], rnn, params)
        ref_outs.append(y_ref[0])
    ref_outs = jnp.stack(ref_outs)

    assert outs.shape == (NSTEPS, BATCH, OUTPUT_SIZE)
    assert final_states.shape == rnn0.shape
    assert jnp.allclose(outs, ref_outs, **TOL)
    assert jnp.allclose(final_states, rnn, **TOL)

    # ---- spec-faithful single-call API (PyTorch in/out layout) ----
    y1, s1 = jax.block_until_ready(custom_mamba_forward(xs_seq[0][None], rnn0, packed))
    y1_ref, s1_ref = reference_forward(xs_seq[0][None], rnn0, params)
    assert y1.shape == (SEQ, BATCH, OUTPUT_SIZE)
    assert s1.shape == rnn0.shape
    assert jnp.allclose(y1, y1_ref, **TOL)
    assert jnp.allclose(s1, s1_ref, **TOL)

    print("KERNEL_OK")
</pallas_src>

<mosaic_0001>
module attributes {stable_mosaic.version = 11 : i64} {
  func.func @_mamba_step_kernel(%arg0: i32, %arg1: i32, %arg2: memref<8x12xf32, #tpu.memory_space<vmem>>, %arg3: memref<1x4x8x64xf32, #tpu.memory_space<vmem>>, %arg4: memref<1x8x16x64xf32, #tpu.memory_space<vmem>>, %arg5: memref<1x160x128xbf16, #tpu.memory_space<vmem>>, %arg6: memref<1x32x64xf32, #tpu.memory_space<vmem>>, %arg7: memref<48x128xf32, #tpu.memory_space<vmem>>, %arg8: memref<8x128xf32, #tpu.memory_space<vmem>>, %arg9: memref<1x4x8x64xf32, #tpu.memory_space<vmem>>, %arg10: memref<1x8x16x64xf32, #tpu.memory_space<vmem>>, %arg11: memref<8x32xf32, #tpu.memory_space<vmem>>, %arg12: memref<8x32xf32, #tpu.memory_space<vmem>>) attributes {dimension_semantics = [#tpu.dimension_semantics<parallel>, #tpu.dimension_semantics<arbitrary>], iteration_bounds = array<i64: 2, 2>, scalar_prefetch = 0 : i64, scratch_operands = 2 : i64, tpu.core_type = #tpu.core_type<tc>, window_params = [{transform_indices = @transform_0, window_bounds = array<i64: 8, 12>}, {transform_indices = @transform_1, window_bounds = array<i64: 1, 4, 8, 64>}, {transform_indices = @transform_2, window_bounds = array<i64: 1, 8, 16, 64>}, {transform_indices = @transform_3, window_bounds = array<i64: 1, 160, 128>}, {transform_indices = @transform_4, window_bounds = array<i64: 1, 32, 64>}, {pipeline_mode = #tpu.pipeline_mode<synchronous>, transform_indices = @transform_5, window_bounds = array<i64: 48, 128>}, {transform_indices = @transform_6, window_bounds = array<i64: 8, 128>}, {transform_indices = @transform_7, window_bounds = array<i64: 1, 4, 8, 64>}, {transform_indices = @transform_8, window_bounds = array<i64: 1, 8, 16, 64>}]} {
    %c0_i32 = arith.constant 0 : i32
    %0 = arith.cmpi eq, %arg1, %c0_i32 : i32
    %1 = arith.extui %0 : i1 to i32
    %c0_i32_0 = arith.constant 0 : i32
    %2 = arith.cmpi ne, %1, %c0_i32_0 : i32
    scf.if %2 {
      %c0_60 = arith.constant 0 : index
      %c0_61 = arith.constant 0 : index
      %150 = vector.load %arg2[%c0_60, %c0_61] : memref<8x12xf32, #tpu.memory_space<vmem>>, vector<8x12xf32>
      %c32_62 = arith.constant 32 : index
      %c0_63 = arith.constant 0 : index
      %151 = vector.load %arg7[%c32_62, %c0_63] : memref<48x128xf32, #tpu.memory_space<vmem>>, vector<12x128xf32>
      %c44 = arith.constant 44 : index
      %c0_64 = arith.constant 0 : index
      %152 = vector.load %arg7[%c44, %c0_64] : memref<48x128xf32, #tpu.memory_space<vmem>>, vector<1x128xf32>
      %cst_65 = arith.constant dense<0.000000e+00> : vector<8x128xf32>
      %153 = tpu.matmul %150, %151, %cst_65 {dimension_numbers = #tpu.dot_dimension_numbers<[1], [0], [0], [1], [0, 0, 1, 1], [], []>} : vector<8x12xf32>, vector<12x128xf32>, vector<8x128xf32> -> vector<8x128xf32>
      %154 = vector.broadcast %152 : vector<1x128xf32> to vector<8x128xf32>
      %155 = arith.addf %153, %154 : vector<8x128xf32>
      %156 = vector.extract_strided_slice %155 {offsets = [0, 0], sizes = [8, 32], strides = [1, 1]} : vector<8x128xf32> to vector<8x32xf32>
      %c0_66 = arith.constant 0 : index
      %c0_67 = arith.constant 0 : index
      %157 = vector.load %arg12[%c0_66, %c0_67] : memref<8x32xf32, #tpu.memory_space<vmem>>, vector<8x32xf32>
      tpu.vector_store %arg12[%c0_66, %c0_67], %156 {strides = array<i32>} : memref<8x32xf32, #tpu.memory_space<vmem>>, vector<8x32xf32>,
    } else {
    }
    %c0_i32_1 = arith.constant 0 : i32
    %3 = arith.cmpi sgt, %arg1, %c0_i32_1 : i32
    %4 = arith.extui %3 : i1 to i32
    %c0_i32_2 = arith.constant 0 : i32
    %5 = arith.cmpi ne, %4, %c0_i32_2 : i32
    scf.if %5 {
      %c0_60 = arith.constant 0 : index
      %c0_61 = arith.constant 0 : index
      %150 = vector.load %arg12[%c0_60, %c0_61] : memref<8x32xf32, #tpu.memory_space<vmem>>, vector<8x32xf32>
      %c0_62 = arith.constant 0 : index
      %c0_63 = arith.constant 0 : index
      %151 = vector.load %arg11[%c0_62, %c0_63] : memref<8x32xf32, #tpu.memory_space<vmem>>, vector<8x32xf32>
      %152 = arith.addf %150, %151 : vector<8x32xf32>
      %c0_64 = arith.constant 0 : index
      %c0_65 = arith.constant 0 : index
      %153 = vector.load %arg12[%c0_64, %c0_65] : memref<8x32xf32, #tpu.memory_space<vmem>>, vector<8x32xf32>
      tpu.vector_store %arg12[%c0_64, %c0_65], %152 {strides = array<i32>} : memref<8x32xf32, #tpu.memory_space<vmem>>, vector<8x32xf32>,
    } else {
    }
    %c0 = arith.constant 0 : index
    %c0_3 = arith.constant 0 : index
    %6 = vector.load %arg12[%c0, %c0_3] : memref<8x32xf32, #tpu.memory_space<vmem>>, vector<8x32xf32>
    %c0_4 = arith.constant 0 : index
    %c23 = arith.constant 23 : index
    %c0_5 = arith.constant 0 : index
    %7 = vector.load %arg6[%c0_4, %c23, %c0_5] : memref<1x32x64xf32, #tpu.memory_space<vmem>>, vector<1x1x32xf32>
    %8 = vector.shape_cast %7 : vector<1x1x32xf32> to vector<1x32xf32>
    %c0_6 = arith.constant 0 : index
    %c24 = arith.constant 24 : index
    %c0_7 = arith.constant 0 : index
    %9 = vector.load %arg6[%c0_6, %c24, %c0_7] : memref<1x32x64xf32, #tpu.memory_space<vmem>>, vector<1x1x32xf32>
    %10 = vector.shape_cast %9 : vector<1x1x32xf32> to vector<1x32xf32>
    %cst = arith.constant dense<0.000000e+00> : vector<8xf32>
    %11 = vector.multi_reduction <add>, %6, %cst [1] : vector<8x32xf32> to vector<8xf32>
    %12 = vector.shape_cast %11 : vector<8xf32> to vector<8x1xf32>
    %cst_8 = arith.constant 3.200000e+01 : f32
    %13 = vector.broadcast %cst_8 : f32 to vector<8x1xf32>
    %14 = arith.divf %12, %13 : vector<8x1xf32>
    %15 = vector.broadcast %14 : vector<8x1xf32> to vector<8x32xf32>
    %16 = arith.subf %6, %15 : vector<8x32xf32>
    %17 = arith.mulf %16, %16 : vector<8x32xf32>
    %cst_9 = arith.constant dense<0.000000e+00> : vector<8xf32>
    %18 = vector.multi_reduction <add>, %17, %cst_9 [1] : vector<8x32xf32> to vector<8xf32>
    %19 = vector.shape_cast %18 : vector<8xf32> to vector<8x1xf32>
    %cst_10 = arith.constant 3.200000e+01 : f32
    %20 = vector.broadcast %cst_10 : f32 to vector<8x1xf32>
    %21 = arith.divf %19, %20 : vector<8x1xf32>
    %cst_11 = arith.constant 9.99999974E-6 : f32
    %22 = vector.broadcast %cst_11 : f32 to vector<8x1xf32>
    %23 = arith.addf %21, %22 : vector<8x1xf32>
    %24 = math.rsqrt %23 : vector<8x1xf32>
    %25 = vector.broadcast %24 : vector<8x1xf32> to vector<8x32xf32>
    %26 = arith.mulf %16, %25 : vector<8x32xf32>
    %27 = vector.broadcast %8 : vector<1x32xf32> to vector<8x32xf32>
    %28 = arith.mulf %26, %27 : vector<8x32xf32>
    %29 = vector.broadcast %10 : vector<1x32xf32> to vector<8x32xf32>
    %30 = arith.addf %28, %29 : vector<8x32xf32>
    %c0_12 = arith.constant 0 : index
    %c0_13 = arith.constant 0 : index
    %c0_14 = arith.constant 0 : index
    %31 = vector.load %arg5[%c0_12, %c0_13, %c0_14] : memref<1x160x128xbf16, #tpu.memory_space<vmem>>, vector<1x32x128xbf16>
    %32 = vector.shape_cast %31 : vector<1x32x128xbf16> to vector<32x128xbf16>
    %33 = arith.truncf %30 : vector<8x32xf32> to vector<8x32xbf16>
    %cst_15 = arith.constant dense<0.000000e+00> : vector<8x128xf32>
    %34 = tpu.matmul %33, %32, %cst_15 {dimension_numbers = #tpu.dot_dimension_numbers<[1], [0], [0], [1], [0, 0, 1, 1], [], []>} : vector<8x32xbf16>, vector<32x128xbf16>, vector<8x128xf32> -> vector<8x128xf32>
    %35 = vector.extract_strided_slice %34 {offsets = [0, 0], sizes = [8, 64], strides = [1, 1]} : vector<8x128xf32> to vector<8x64xf32>
    %36 = vector.extract_strided_slice %34 {offsets = [0, 64], sizes = [8, 64], strides = [1, 1]} : vector<8x128xf32> to vector<8x64xf32>
    %c0_16 = arith.constant 0 : index
    %c16 = arith.constant 16 : index
    %c0_17 = arith.constant 0 : index
    %37 = vector.load %arg6[%c0_16, %c16, %c0_17] : memref<1x32x64xf32, #tpu.memory_space<vmem>>, vector<1x4x64xf32>
    %38 = vector.shape_cast %37 : vector<1x4x64xf32> to vector<4x64xf32>
    %c0_18 = arith.constant 0 : index
    %c20 = arith.constant 20 : index
    %c0_19 = arith.constant 0 : index
    %39 = vector.load %arg6[%c0_18, %c20, %c0_19] : memref<1x32x64xf32, #tpu.memory_space<vmem>>, vector<1x1x64xf32>
    %40 = vector.shape_cast %39 : vector<1x1x64xf32> to vector<1x64xf32>
    %c0_20 = arith.constant 0 : index
    %c0_21 = arith.constant 0 : index
    %c0_22 = arith.constant 0 : index
    %c0_23 = arith.constant 0 : index
    %41 = vector.load %arg3[%c0_20, %c0_21, %c0_22, %c0_23] : memref<1x4x8x64xf32, #tpu.memory_space<vmem>>, vector<1x4x8x64xf32>
    %42 = vector.shape_cast %41 : vector<1x4x8x64xf32> to vector<4x8x64xf32>
    %43 = vector.extract_strided_slice %38 {offsets = [3, 0], sizes = [1, 64], strides = [1, 1]} : vector<4x64xf32> to vector<1x64xf32>
    %44 = vector.broadcast %43 : vector<1x64xf32> to vector<8x64xf32>
    %45 = arith.mulf %35, %44 : vector<8x64xf32>
    %46 = vector.broadcast %40 : vector<1x64xf32> to vector<8x64xf32>
    %47 = arith.addf %46, %45 : vector<8x64xf32>
    %48 = vector.extract_strided_slice %42 {offsets = [1, 0, 0], sizes = [1, 8, 64], strides = [1, 1, 1]} : vector<4x8x64xf32> to vector<1x8x64xf32>
    %49 = vector.shape_cast %48 : vector<1x8x64xf32> to vector<8x64xf32>
    %50 = vector.extract_strided_slice %38 {offsets = [0, 0], sizes = [1, 64], strides = [1, 1]} : vector<4x64xf32> to vector<1x64xf32>
    %51 = vector.broadcast %50 : vector<1x64xf32> to vector<8x64xf32>
    %52 = arith.mulf %49, %51 : vector<8x64xf32>
    %53 = arith.addf %47, %52 : vector<8x64xf32>
    %54 = vector.extract_strided_slice %42 {offsets = [2, 0, 0], sizes = [1, 8, 64], strides = [1, 1, 1]} : vector<4x8x64xf32> to vector<1x8x64xf32>
    %55 = vector.shape_cast %54 : vector<1x8x64xf32> to vector<8x64xf32>
    %56 = vector.extract_strided_slice %38 {offsets = [1, 0], sizes = [1, 64], strides = [1, 1]} : vector<4x64xf32> to vector<1x64xf32>
    %57 = vector.broadcast %56 : vector<1x64xf32> to vector<8x64xf32>
    %58 = arith.mulf %55, %57 : vector<8x64xf32>
    %59 = arith.addf %53, %58 : vector<8x64xf32>
    %60 = vector.extract_strided_slice %42 {offsets = [3, 0, 0], sizes = [1, 8, 64], strides = [1, 1, 1]} : vector<4x8x64xf32> to vector<1x8x64xf32>
    %61 = vector.shape_cast %60 : vector<1x8x64xf32> to vector<8x64xf32>
    %62 = vector.extract_strided_slice %38 {offsets = [2, 0], sizes = [1, 64], strides = [1, 1]} : vector<4x64xf32> to vector<1x64xf32>
    %63 = vector.broadcast %62 : vector<1x64xf32> to vector<8x64xf32>
    %64 = arith.mulf %61, %63 : vector<8x64xf32>
    %65 = arith.addf %59, %64 : vector<8x64xf32>
    %66 = vector.extract_strided_slice %42 {offsets = [1, 0, 0], sizes = [3, 8, 64], strides = [1, 1, 1]} : vector<4x8x64xf32> to vector<3x8x64xf32>
    %c0_24 = arith.constant 0 : index
    %c0_25 = arith.constant 0 : index
    %c0_26 = arith.constant 0 : index
    %c0_27 = arith.constant 0 : index
    %67 = vector.load %arg9[%c0_24, %c0_25, %c0_26, %c0_27] : memref<1x4x8x64xf32, #tpu.memory_space<vmem>>, vector<1x3x8x64xf32>
    %68 = vector.shape_cast %67 : vector<1x3x8x64xf32> to vector<3x8x64xf32>
    %69 = vector.shape_cast %66 : vector<3x8x64xf32> to vector<1x3x8x64xf32>
    tpu.vector_store %arg9[%c0_24, %c0_25, %c0_26, %c0_27], %69 {strides = array<i32>} : memref<1x4x8x64xf32, #tpu.memory_space<vmem>>, vector<1x3x8x64xf32>,
    %c0_28 = arith.constant 0 : index
    %c3 = arith.constant 3 : index
    %c0_29 = arith.constant 0 : index
    %c0_30 = arith.constant 0 : index
    %70 = vector.load %arg9[%c0_28, %c3, %c0_29, %c0_30] : memref<1x4x8x64xf32, #tpu.memory_space<vmem>>, vector<1x1x8x64xf32>
    %71 = vector.shape_cast %70 : vector<1x1x8x64xf32> to vector<8x64xf32>
    %72 = vector.shape_cast %35 : vector<8x64xf32> to vector<1x1x8x64xf32>
    tpu.vector_store %arg9[%c0_28, %c3, %c0_29, %c0_30], %72 {strides = array<i32>} : memref<1x4x8x64xf32, #tpu.memory_space<vmem>>, vector<1x1x8x64xf32>,
    %73 = arith.negf %65 : vector<8x64xf32>
    %74 = math.exp %73 : vector<8x64xf32>
    %cst_31 = arith.constant 1.000000e+00 : f32
    %75 = vector.broadcast %cst_31 : f32 to vector<8x64xf32>
    %76 = arith.addf %75, %74 : vector<8x64xf32>
    %77 = arith.divf %75, %76 : vector<8x64xf32>
    %78 = arith.mulf %65, %77 : vector<8x64xf32>
    %c0_32 = arith.constant 0 : index
    %c32 = arith.constant 32 : index
    %c0_33 = arith.constant 0 : index
    %79 = vector.load %arg5[%c0_32, %c32, %c0_33] : memref<1x160x128xbf16, #tpu.memory_space<vmem>>, vector<1x64x128xbf16>
    %80 = vector.shape_cast %79 : vector<1x64x128xbf16> to vector<64x128xbf16>
    %c0_34 = arith.constant 0 : index
    %c21 = arith.constant 21 : index
    %c0_35 = arith.constant 0 : index
    %81 = vector.load %arg6[%c0_34, %c21, %c0_35] : memref<1x32x64xf32, #tpu.memory_space<vmem>>, vector<1x1x64xf32>
    %82 = vector.shape_cast %81 : vector<1x1x64xf32> to vector<1x64xf32>
    %83 = arith.truncf %78 : vector<8x64xf32> to vector<8x64xbf16>
    %cst_36 = arith.constant dense<0.000000e+00> : vector<8x128xf32>
    %84 = tpu.matmul %83, %80, %cst_36 {dimension_numbers = #tpu.dot_dimension_numbers<[1], [0], [0], [1], [0, 0, 1, 1], [], []>} : vector<8x64xbf16>, vector<64x128xbf16>, vector<8x128xf32> -> vector<8x128xf32>
    %85 = vector.extract_strided_slice %84 {offsets = [0, 0], sizes = [8, 64], strides = [1, 1]} : vector<8x128xf32> to vector<8x64xf32>
    %86 = vector.broadcast %82 : vector<1x64xf32> to vector<8x64xf32>
    %87 = arith.addf %85, %86 : vector<8x64xf32>
    %cst_37 = arith.constant 0.000000e+00 : f32
    %88 = vector.broadcast %cst_37 : f32 to vector<8x64xf32>
    %89 = arith.maximumf %87, %88 : vector<8x64xf32>
    %90 = vector.broadcast %cst_37 : f32 to vector<8x64xf32>
    %91 = arith.subf %87, %90 : vector<8x64xf32>
    %92 = arith.cmpf one, %91, %91 : vector<8x64xf32>
    %93 = vector.broadcast %cst_37 : f32 to vector<8x64xf32>
    %94 = arith.addf %87, %93 : vector<8x64xf32>
    %95 = math.absf %91 : vector<8x64xf32>
    %cst_38 = arith.constant 0.000000e+00 : f32
    %96 = vector.broadcast %cst_38 : f32 to vector<8x64xf32>
    %97 = arith.subf %96, %95 : vector<8x64xf32>
    %98 = math.exp %97 : vector<8x64xf32>
    %99 = math.log1p %98 : vector<8x64xf32>
    %100 = arith.addf %89, %99 : vector<8x64xf32>
    %101 = arith.select %92, %94, %100 : vector<8x64xi1>, vector<8x64xf32>
    %102 = vector.extract_strided_slice %84 {offsets = [0, 64], sizes = [8, 16], strides = [1, 1]} : vector<8x128xf32> to vector<8x16xf32>
    %103 = vector.extract_strided_slice %84 {offsets = [0, 80], sizes = [8, 16], strides = [1, 1]} : vector<8x128xf32> to vector<8x16xf32>
    %c0_39 = arith.constant 0 : index
    %c0_40 = arith.constant 0 : index
    %c0_41 = arith.constant 0 : index
    %104 = vector.load %arg6[%c0_39, %c0_40, %c0_41] : memref<1x32x64xf32, #tpu.memory_space<vmem>>, vector<1x16x64xf32>
    %105 = vector.shape_cast %104 : vector<1x16x64xf32> to vector<16x64xf32>
    %c0_42 = arith.constant 0 : index
    %c0_43 = arith.constant 0 : index
    %c0_44 = arith.constant 0 : index
    %c0_45 = arith.constant 0 : index
    %106 = vector.load %arg4[%c0_42, %c0_43, %c0_44, %c0_45] : memref<1x8x16x64xf32, #tpu.memory_space<vmem>>, vector<1x8x16x64xf32>
    %107 = vector.shape_cast %106 : vector<1x8x16x64xf32> to vector<8x16x64xf32>
    %108 = vector.shape_cast %101 : vector<8x64xf32> to vector<8x1x64xf32>
    %109 = vector.shape_cast %105 : vector<16x64xf32> to vector<1x16x64xf32>
    %110 = vector.broadcast %108 : vector<8x1x64xf32> to vector<8x16x64xf32>
    %111 = vector.broadcast %109 : vector<1x16x64xf32> to vector<8x16x64xf32>
    %112 = arith.mulf %110, %111 : vector<8x16x64xf32>
    %113 = math.exp %112 : vector<8x16x64xf32>
    %114 = arith.mulf %107, %113 : vector<8x16x64xf32>
    %115 = arith.mulf %101, %78 : vector<8x64xf32>
    %116 = vector.shape_cast %115 : vector<8x64xf32> to vector<8x1x64xf32>
    %117 = vector.shape_cast %102 : vector<8x16xf32> to vector<8x16x1xf32>
    %118 = vector.broadcast %116 : vector<8x1x64xf32> to vector<8x16x64xf32>
    %119 = vector.broadcast %117 : vector<8x16x1xf32> to vector<8x16x64xf32>
    %120 = arith.mulf %118, %119 : vector<8x16x64xf32>
    %121 = arith.addf %114, %120 : vector<8x16x64xf32>
    %c0_46 = arith.constant 0 : index
    %c0_47 = arith.constant 0 : index
    %c0_48 = arith.constant 0 : index
    %c0_49 = arith.constant 0 : index
    %122 = vector.load %arg10[%c0_46, %c0_47, %c0_48, %c0_49] : memref<1x8x16x64xf32, #tpu.memory_space<vmem>>, vector<1x8x16x64xf32>
    %123 = vector.shape_cast %122 : vector<1x8x16x64xf32> to vector<8x16x64xf32>
    %124 = vector.shape_cast %121 : vector<8x16x64xf32> to vector<1x8x16x64xf32>
    tpu.vector_store %arg10[%c0_46, %c0_47, %c0_48, %c0_49], %124 {strides = array<i32>} : memref<1x8x16x64xf32, #tpu.memory_space<vmem>>, vector<1x8x16x64xf32>,
    %125 = vector.shape_cast %103 : vector<8x16xf32> to vector<8x16x1xf32>
    %126 = vector.broadcast %125 : vector<8x16x1xf32> to vector<8x16x64xf32>
    %127 = arith.mulf %121, %126 : vector<8x16x64xf32>
    %cst_50 = arith.constant dense<0.000000e+00> : vector<8x64xf32>
    %128 = vector.multi_reduction <add>, %127, %cst_50 [1] : vector<8x16x64xf32> to vector<8x64xf32>
    %c0_51 = arith.constant 0 : index
    %c22 = arith.constant 22 : index
    %c0_52 = arith.constant 0 : index
    %129 = vector.load %arg6[%c0_51, %c22, %c0_52] : memref<1x32x64xf32, #tpu.memory_space<vmem>>, vector<1x1x64xf32>
    %130 = vector.shape_cast %129 : vector<1x1x64xf32> to vector<1x64xf32>
    %131 = vector.broadcast %130 : vector<1x64xf32> to vector<8x64xf32>
    %132 = arith.mulf %131, %78 : vector<8x64xf32>
    %133 = arith.addf %128, %132 : vector<8x64xf32>
    %134 = arith.negf %36 : vector<8x64xf32>
    %135 = math.exp %134 : vector<8x64xf32>
    %cst_53 = arith.constant 1.000000e+00 : f32
    %136 = vector.broadcast %cst_53 : f32 to vector<8x64xf32>
    %137 = arith.addf %136, %135 : vector<8x64xf32>
    %138 = arith.divf %136, %137 : vector<8x64xf32>
    %139 = arith.mulf %36, %138 : vector<8x64xf32>
    %140 = arith.mulf %133, %139 : vector<8x64xf32>
    %c0_54 = arith.constant 0 : index
    %c96 = arith.constant 96 : index
    %c0_55 = arith.constant 0 : index
    %141 = vector.load %arg5[%c0_54, %c96, %c0_55] : memref<1x160x128xbf16, #tpu.memory_space<vmem>>, vector<1x64x128xbf16>
    %142 = vector.shape_cast %141 : vector<1x64x128xbf16> to vector<64x128xbf16>
    %143 = arith.truncf %140 : vector<8x64xf32> to vector<8x64xbf16>
    %cst_56 = arith.constant dense<0.000000e+00> : vector<8x128xf32>
    %144 = tpu.matmul %143, %142, %cst_56 {dimension_numbers = #tpu.dot_dimension_numbers<[1], [0], [0], [1], [0, 0, 1, 1], [], []>} : vector<8x64xbf16>, vector<64x128xbf16>, vector<8x128xf32> -> vector<8x128xf32>
    %145 = vector.extract_strided_slice %144 {offsets = [0, 0], sizes = [8, 32], strides = [1, 1]} : vector<8x128xf32> to vector<8x32xf32>
    %c0_57 = arith.constant 0 : index
    %c0_58 = arith.constant 0 : index
    %146 = vector.load %arg11[%c0_57, %c0_58] : memref<8x32xf32, #tpu.memory_space<vmem>>, vector<8x32xf32>
    tpu.vector_store %arg11[%c0_57, %c0_58], %145 {strides = array<i32>} : memref<8x32xf32, #tpu.memory_space<vmem>>, vector<8x32xf32>,
    %c1_i32 = arith.constant 1 : i32
    %147 = arith.cmpi eq, %arg1, %c1_i32 : i32
    %148 = arith.extui %147 : i1 to i32
    %c0_i32_59 = arith.constant 0 : i32
    %149 = arith.cmpi ne, %148, %c0_i32_59 : i32
    scf.if %149 {
      %c0_60 = arith.constant 0 : index
      %c0_61 = arith.constant 0 : index
      %150 = vector.load %arg12[%c0_60, %c0_61] : memref<8x32xf32, #tpu.memory_space<vmem>>, vector<8x32xf32>
      %151 = arith.addf %145, %150 : vector<8x32xf32>
      %c46 = arith.constant 46 : index
      %c0_62 = arith.constant 0 : index
      %152 = vector.load %arg7[%c46, %c0_62] : memref<48x128xf32, #tpu.memory_space<vmem>>, vector<1x32xf32>
      %c47 = arith.constant 47 : index
      %c0_63 = arith.constant 0 : index
      %153 = vector.load %arg7[%c47, %c0_63] : memref<48x128xf32, #tpu.memory_space<vmem>>, vector<1x32xf32>
      %cst_64 = arith.constant dense<0.000000e+00> : vector<8xf32>
      %154 = vector.multi_reduction <add>, %151, %cst_64 [1] : vector<8x32xf32> to vector<8xf32>
      %155 = vector.shape_cast %154 : vector<8xf32> to vector<8x1xf32>
      %cst_65 = arith.constant 3.200000e+01 : f32
      %156 = vector.broadcast %cst_65 : f32 to vector<8x1xf32>
      %157 = arith.divf %155, %156 : vector<8x1xf32>
      %158 = vector.broadcast %157 : vector<8x1xf32> to vector<8x32xf32>
      %159 = arith.subf %151, %158 : vector<8x32xf32>
      %160 = arith.mulf %159, %159 : vector<8x32xf32>
      %cst_66 = arith.constant dense<0.000000e+00> : vector<8xf32>
      %161 = vector.multi_reduction <add>, %160, %cst_66 [1] : vector<8x32xf32> to vector<8xf32>
      %162 = vector.shape_cast %161 : vector<8xf32> to vector<8x1xf32>
      %cst_67 = arith.constant 3.200000e+01 : f32
      %163 = vector.broadcast %cst_67 : f32 to vector<8x1xf32>
      %164 = arith.divf %162, %163 : vector<8x1xf32>
      %cst_68 = arith.constant 9.99999974E-6 : f32
      %165 = vector.broadcast %cst_68 : f32 to vector<8x1xf32>
      %166 = arith.addf %164, %165 : vector<8x1xf32>
      %167 = math.rsqrt %166 : vector<8x1xf32>
      %168 = vector.broadcast %167 : vector<8x1xf32> to vector<8x32xf32>
      %169 = arith.mulf %159, %168 : vector<8x32xf32>
      %170 = vector.broadcast %152 : vector<1x32xf32> to vector<8x32xf32>
      %171 = arith.mulf %169, %170 : vector<8x32xf32>
      %172 = vector.broadcast %153 : vector<1x32xf32> to vector<8x32xf32>
      %173 = arith.addf %171, %172 : vector<8x32xf32>
      %c0_69 = arith.constant 0 : index
      %c0_70 = arith.constant 0 : index
      %174 = vector.load %arg7[%c0_69, %c0_70] : memref<48x128xf32, #tpu.memory_space<vmem>>, vector<32x128xf32>
      %c45 = arith.constant 45 : index
      %c0_71 = arith.constant 0 : index
      %175 = vector.load %arg7[%c45, %c0_71] : memref<48x128xf32, #tpu.memory_space<vmem>>, vector<1x128xf32>
      %cst_72 = arith.constant dense<0.000000e+00> : vector<8x128xf32>
      %176 = tpu.matmul %173, %174, %cst_72 {dimension_numbers = #tpu.dot_dimension_numbers<[1], [0], [0], [1], [0, 0, 1, 1], [], []>} : vector<8x32xf32>, vector<32x128xf32>, vector<8x128xf32> -> vector<8x128xf32>
      %177 = vector.broadcast %175 : vector<1x128xf32> to vector<8x128xf32>
      %178 = arith.addf %176, %177 : vector<8x128xf32>
      %c0_73 = arith.constant 0 : index
      %c0_74 = arith.constant 0 : index
      %179 = vector.load %arg8[%c0_73, %c0_74] : memref<8x128xf32, #tpu.memory_space<vmem>>, vector<8x128xf32>
      tpu.vector_store %arg8[%c0_73, %c0_74], %178 {strides = array<i32>} : memref<8x128xf32, #tpu.memory_space<vmem>>, vector<8x128xf32>,
    } else {
    }
    return
  }
  func.func @transform_0(%arg0: i32, %arg1: i32) -> (i32, i32) {
    %c0_i32 = arith.constant 0 : i32
    %c0_i32_0 = arith.constant 0 : i32
    return %arg0, %c0_i32 : i32, i32
  }
  func.func @transform_1(%arg0: i32, %arg1: i32) -> (i32, i32, i32, i32) {
    %c0_i32 = arith.constant 0 : i32
    %c0_i32_0 = arith.constant 0 : i32
    %c0_i32_1 = arith.constant 0 : i32
    return %arg1, %c0_i32, %arg0, %c0_i32_0 : i32, i32, i32, i32
  }
  func.func @transform_2(%arg0: i32, %arg1: i32) -> (i32, i32, i32, i32) {
    %c0_i32 = arith.constant 0 : i32
    %c0_i32_0 = arith.constant 0 : i32
    %c0_i32_1 = arith.constant 0 : i32
    return %arg1, %arg0, %c0_i32, %c0_i32_0 : i32, i32, i32, i32
  }
  func.func @transform_3(%arg0: i32, %arg1: i32) -> (i32, i32, i32) {
    %c0_i32 = arith.constant 0 : i32
    %c0_i32_0 = arith.constant 0 : i32
    %c0_i32_1 = arith.constant 0 : i32
    return %arg1, %c0_i32, %c0_i32_0 : i32, i32, i32
  }
  func.func @transform_4(%arg0: i32, %arg1: i32) -> (i32, i32, i32) {
    %c0_i32 = arith.constant 0 : i32
    %c0_i32_0 = arith.constant 0 : i32
    %c0_i32_1 = arith.constant 0 : i32
    return %arg1, %c0_i32, %c0_i32_0 : i32, i32, i32
  }
  func.func @transform_5(%arg0: i32, %arg1: i32) -> (i32, i32) {
    %c0_i32 = arith.constant 0 : i32
    %c0_i32_0 = arith.constant 0 : i32
    %c0_i32_1 = arith.constant 0 : i32
    return %c0_i32, %c0_i32_0 : i32, i32
  }
  func.func @transform_6(%arg0: i32, %arg1: i32) -> (i32, i32) {
    %c0_i32 = arith.constant 0 : i32
    %c0_i32_0 = arith.constant 0 : i32
    return %arg0, %c0_i32 : i32, i32
  }
  func.func @transform_7(%arg0: i32, %arg1: i32) -> (i32, i32, i32, i32) {
    %c0_i32 = arith.constant 0 : i32
    %c0_i32_0 = arith.constant 0 : i32
    %c0_i32_1 = arith.constant 0 : i32
    return %arg1, %c0_i32, %arg0, %c0_i32_0 : i32, i32, i32, i32
  }
  func.func @transform_8(%arg0: i32, %arg1: i32) -> (i32, i32, i32, i32) {
    %c0_i32 = arith.constant 0 : i32
    %c0_i32_0 = arith.constant 0 : i32
    %c0_i32_1 = arith.constant 0 : i32
    return %arg1, %arg0, %c0_i32, %c0_i32_0 : i32, i32, i32, i32
  }
}

</mosaic_0001>

<bundles_post_ra>
// kernel: mamba_step_native.1
= control target key start
LH: loop header
LB: loop body
LE: loop exit
PB: predicated region body
PF: predicated region fallthrough
CT: control target
= control target key end

     0   :  { %s3731_s0 = inlined_call_operand.hbm [shape: f32[16,12], index: 0, kind: input, shape index: {}]   ;;  %s3732_s1 = inlined_call_operand.hbm [shape: f32[2,4,16,64], index: 1, kind: input, shape index: {}, may-alias: {1,7}]   ;;  %s3733_s2 = inlined_call_operand.hbm [shape: f32[2,16,16,64], index: 2, kind: input, shape index: {}, may-alias: {2,8}]   ;;  %s3734_s3 = inlined_call_operand.hbm [shape: bf16[2,160,128], index: 3, kind: input, shape index: {}]   ;;  %s3735_s4 = inlined_call_operand.hbm [shape: f32[2,32,64], index: 4, kind: input, shape index: {}]   ;;  %s3736_s5 = inlined_call_operand.hbm [shape: f32[48,128], index: 5, kind: input, shape index: {}]   ;;  %s3737_s6 = inlined_call_operand.hbm [shape: f32[16,128], index: 6, kind: output, shape index: {0}]   ;;  %s3738_s7 = inlined_call_operand.hbm [shape: f32[2,4,16,64], index: 7, kind: output, shape index: {1}, may-alias: {1,7}]   ;;  %s3739_s8 = inlined_call_operand.hbm [shape: f32[2,16,16,64], index: 8, kind: output, shape index: {2}, may-alias: {2,8}]  }
   0x1   :  { %3790 = sst [smem:[#allocation48_spill]] %s3731_s0 }
   0x2   :  { %3791 = sst [smem:[#allocation49_spill]] %s3732_s1 }
   0x3   :  { %3792 = sst [smem:[#allocation50_spill]] %s3733_s2 }
   0x4   :  { %3793 = sst [smem:[#allocation51_spill]] %s3734_s3 }
   0x5   :  { %3794 = sst [smem:[#allocation52_spill]] %s3735_s4 }
   0x6   :  { %3795 = sst [smem:[#allocation53_spill]] %s3736_s5 }
   0x7   :  { %3796 = sst [smem:[#allocation54_spill]] %s3737_s6 }
   0x8   :  { %3797 = sst [smem:[#allocation55_spill]] %s3738_s7 }
   0x9   :  { %3798 = sst [smem:[#allocation56_spill]] %s3739_s8 }
   0xa   :  { %14 = vsyncpa [#allocation5], 0 }
   0xb   :  { %16 = vsyncpa [#allocation5 + $0x1], 0 }
   0xc   :  { %17 = vsyncpa [#allocation8], 0 }
   0xd   :  { %19 = vsyncpa [#allocation8 + $0x1], 0 }
   0xe   :  { %20 = vsyncpa [#allocation11], 0 }
   0xf   :  { %22 = vsyncpa [#allocation11 + $0x1], 0 }
  0x10   :  { %23 = vsyncpa [#allocation14], 0 }
  0x11   :  { %24 = vsyncpa [#allocation6], 0 }
  0x12   :  { %26 = vsyncpa [#allocation6 + $0x1], 0 }
  0x13   :  { %27 = vsyncpa [#allocation17], 0 }
  0x14   :  { %29 = vsyncpa [#allocation17 + $0x1], 0  ;;  %s2889_s27 = smov 0   ;;  %s2891_s28 = smov 0  }
  0x15   :  { %s2893_s29 = smov 0   ;;  %s2895_s30 = smov 0  }
  0x16   :  { %s2897_s9 = smov 0   ;;  %s2899_s10 = smov 0  }
  0x17   :  { %s2901_s11 = smov 0   ;;  %s2903_s12 = smov 0  }
  0x18   :  { %s2905_s13 = smov 0   ;;  %s2907_s14 = smov 0  }
  0x19   :  { %s2909_s15 = smov 0   ;;  %s2911_s16 = smov 0  }
  0x1a   :  { %s2913_s17 = smov 0   ;;  %s2915_s18 = smov 0  }
  0x1b LB: > { %3799 = sst [smem:[#allocation25_spill]] %s2769_s28  ;;  %p3760_p0 = scmp.eq.s32.totalorder %s2817_s18, 0  ;;  %s2817_s18 = sphi %s2915_s18, %s35_s18   ;;  %s2813_s17 = sphi %s2913_s17, %s3895_s17   ;;  %s2809_s16 = sphi %s2911_s16, %s3901_s16   ;;  %s2805_s15 = sphi %s2909_s15, %s3900_s15   ;;  %s2801_s14 = sphi %s2907_s14, %s3899_s14   ;;  %s2797_s13 = sphi %s2905_s13, %s3892_s13   ;;  %s2793_s12 = sphi %s2903_s12, %s3898_s12   ;;  %s2789_s11 = sphi %s2901_s11, %s3897_s11   ;;  %s2785_s10 = sphi %s2899_s10, %s3890_s10   ;;  %s2781_s9 = sphi %s2897_s9, %s3889_s9   ;;  %s2777_s30 = sphi %s2895_s30, %s3888_s30   ;;  %s2773_s29 = sphi %s2893_s29, %s3887_s29   ;;  %s2769_s28 = sphi %s2891_s28, %s3886_s28   ;;  %s2765_s27 = sphi %s2889_s27, %s3885_s27  }
  0x1c   : > { %3800 = sst [smem:[#allocation26_spill]] %s2773_s29  ;;  %p3759_p1 = scmp.ne.s32.totalorder %s2785_s10, %s2781_s9 }
  0x1d   : > { %3801 = sst [smem:[#allocation27_spill]] %s2781_s9  ;;  %p3757_p3 = scmp.lt.s32.totalorder %s2817_s18, 4 }
  0x1e   : > { %3802 = sst [smem:[#allocation28_spill]] %s2785_s10  ;;  %p91_p2 = por %p3759_p1, %p3760_p0 }
  0x1f   : > { %3803 = sst [smem:[#allocation29_spill]] %s2789_s11  ;;  %s3750_s20 = sand.u32 1, %s2817_s18  }
  0x20   : > { %3804 = sst [smem:[#allocation30_spill]] %s2797_s13  ;;  %s3745_s21 = sand.u32 1, %s2785_s10  }
  0x21   : > { %3805 = sst [smem:[#allocation31_spill]] %s2801_s14  ;;  %s2057_s22 = sshll.u32 %s3745_s21, 5 }
  0x22   : > { %3806 = sst [smem:[#allocation32_spill]] %s2805_s15  ;;  %s2058_s23 = sshll.u32 %s2809_s16, 3 }
  0x23   : > { %3807 = sst [smem:[#allocation33_spill]] %s2813_s17  ;;  %s342_s24 = sadd.s32 %s2813_s17, %s2058_s23 }
  0x24   : > { %3808 = sst [smem:[#allocation34_spill]] %s2817_s18  ;;  %s337_s25 = scalar_lea.vmem [#allocation7], %s2057_s22 }
  0x25   : > { %s345_s26 = sshll.u32 %s337_s25, 4  ;;  %s2059_s8 = sshll.u32 %s342_s24, 7  ;;  %s346_s26 = int_to_ptr.vmem [resolvable:$true] %s345_s26 }
  0x26   : > { %s3809_s1 = sld [smem:[#allocation49_spill]]  ;;  %p2980_p4 = pnand %p3757_p3, %p91_p2 }
  0x27   : > { %s2986_s14 = scalar_lea.sflag [#allocation8], %s3750_s20  ;;  %s2452_s22 = scalar_lea.vmem %s346_s26, 512 }
  0x28   : > { %s3810_s19 = scalar_select %p2980_p4, 1, 0 }
  0x29   : > { %3812 = sst [smem:[#allocation36_spill]] %s2986_s14  ;;  %p3756_p5 = pneg %p2980_p4 }
  0x2a   : > { %3811 = sst [smem:[#allocation35_spill]] %s3810_s19  ;;  %p2453_p6 = scmp.ne.s32.totalorder %s346_s26, %s2452_s22 }
  0x2b   : > { %s2819_s6 = smov [#allocation7]  }
  0x2c   : > { %s344_s15 = scalar_lea.hbm %s3809_s1, %s2059_s8  ;;  %p2455_p7 = pnand %p2453_p6, %p3756_p5 }
  0x2d   : > { %s2457_s7 = sshll.u32 %s2819_s6, 4  ;;  %s2458_s7 = int_to_ptr.vmem [resolvable:$false] %s2457_s7 }
  0x2e   : > { %p2456_p8 = pneg %p2455_p7  ;;  %s2459_s8 = scalar_lea.vmem %s2458_s7, 1024 }
  0x2f   : > { %p2460_p9 = scmp.lt.s32.totalorder %s346_s26, %s2458_s7  ;;  %p2461_p10 = scmp.lt.s32.totalorder %s2459_s8, %s2452_s22 }
  0x31   : > { %p2462_p11 = por %p2461_p10, %p2460_p9 }
  0x33   : > { %p2463_p12 = pnand %p2462_p11, %p2456_p8 }
  0x35   : > { %2466 = shalt.err (!%p2463_p12)
}
  0x36   : > { %s2820_s23 = smov 256   ;;  %s3746_s24 = smov 128  }
  0x37   : > { %s3748_s25 = smov 8   ;;  %s44_s22 = sadd.s32 1, %s2809_s16 }
  0x38   : > { %2228 = dma.hbm_to_vmem [thread:$0]  (!%p2980_p4), %s344_s15, 512, %s346_s26, %s2986_s14, %s2820_s23, %s3746_s24, %s3748_s25  }
  0x39   : > { %s136_s6 = sadd.s32 1, %s2773_s29  ;;  %p3000_p13 = scmp.ge.s32.totalorder %s44_s22, 2 }
  0x3a   : > { %p143_p2 = scmp.ne.s32.totalorder %s2773_s29, %s2769_s28  ;;  %p149_p6 = scmp.ne.s32.totalorder %s2769_s28, %s2765_s27 }
  0x3b   : > { %s3903_s22 = smov (%p3000_p13, %s44_s22), 0  ;;  %s3753_s8 = sand.u32 1, %s2773_s29  }
  0x3c   : > { %3814 = sst [smem:[#allocation37_spill]] %s3903_s22  ;;  %p145_p7 = por %p143_p2, %p3760_p0 }
  0x3d   : > { %s3017_s21 = ssub.s32 %s2809_s16, %s3903_s22  ;;  %s2195_s15 = smul.u32 80, %s3753_s8 }
  0x3e   : > { %p134_p8 = scmp.eq.s32.totalorder %s3017_s21, 0  ;;  %s2196_s26 = smul.u32 1280, %s2809_s16 }
  0x3f   : > { %p3025_p9 = pnand %p3757_p3, %p145_p7  ;;  %s3817_s3 = sld [smem:[#allocation51_spill]] }
  0x40   : > { %s3030_s24 = scalar_select %p134_p8, %s2773_s29, %s136_s6  }
  0x41   : > { %s3815_s23 = scalar_select %p3025_p9, 1, 0 }
  0x42   : > { %3816 = sst [smem:[#allocation38_spill]] %s3030_s24  ;;  %s383_s22 = scalar_lea.vmem [#allocation10], %s2195_s15 }
  0x43   : > { %s390_s14 = sshll.u32 %s383_s22, 4  ;;  %s3818_s4 = sand.u32 1, %s2817_s18   ;;  %s391_s14 = int_to_ptr.vmem [resolvable:$true] %s390_s14 }
  0x44   : > { %s3037_s8 = scalar_lea.sflag [#allocation11], %s3818_s4  ;;  %p3758_p10 = pneg %p3025_p9 }
  0x45   : > { %s389_s1 = scalar_lea.hbm %s3817_s3, %s2196_s26  ;;  %s2480_s2 = scalar_lea.vmem %s391_s14, 1280 }
  0x46   : > { %p2481_p11 = scmp.ne.s32.totalorder %s391_s14, %s2480_s2  ;;  %s2823_s6 = smov [#allocation10]  }
  0x47   : > { %s2485_s24 = sshll.u32 %s2823_s6, 4  ;;  %s2486_s24 = int_to_ptr.vmem [resolvable:$false] %s2485_s24 }
  0x48   : > { %p2483_p12 = pnand %p2481_p11, %p3758_p10  ;;  %s2487_s19 = scalar_lea.vmem %s2486_s24, 2560 }
  0x49   : > { %p2488_p7 = scmp.lt.s32.totalorder %s391_s14, %s2486_s24  ;;  %p2489_p8 = scmp.lt.s32.totalorder %s2487_s19, %s2480_s2 }
  0x4a   : > { %p2484_p2 = pneg %p2483_p12 }
  0x4b   : > { %p2490_p5 = por %p2489_p8, %p2488_p7 }
  0x4d   : > { %p2491_p3 = pnand %p2490_p5, %p2484_p2 }
  0x4f   : > { %2494 = shalt.err (!%p2491_p3)
}
  0x50   : > { %s2824_s20 = smov 64   ;;  %s2825_s4 = smov 4  }
  0x51   : > { %2234 = dma.hbm_to_vmem [thread:$0]  (!%p3025_p9), %s389_s1, 1280, %s391_s14, %s3037_s8, %s2824_s20, %s2824_s20, %s2825_s4  }
  0x52   : > { %s3819_s25 = sand.u32 1, %s2773_s29   ;;  %s3052_s24 = sadd.s32 4294967295, %s2817_s18  }
  0x53   : > { %s3049_s22 = sshll.u32 %s3819_s25, 5  ;;  %p2052_p3 = scmp.ge.s32.totalorder %s2817_s18, 1 }
  0x54   : > { %p3770_p5 = scmp.eq.s32.totalorder %s3052_s24, 0  ;;  %p289_p11 = scmp.lt.s32.totalorder %s2817_s18, 5 }
  0x55   : > { %s2826_s1 = smov [#allocation13]  }
  0x56   : > { %p3062_p12 = por %p149_p6, %p3770_p5  ;;  %p3066_p2 = pnand %p2052_p3, %p289_p11 }
  0x57   : > { %s301_s14 = sshll.u32 %s2826_s1, 4  ;;  %s302_s14 = int_to_ptr.vmem [resolvable:$true] %s301_s14 }
  0x58   : > { %s3820_s2 = scalar_select %p3062_p12, 1, 0 }
  0x59   : > { %p2218_p7 = pneg %p3066_p2  ;;  %s2506_s15 = scalar_lea.vmem %s302_s14, 768 }
  0x5a   : > { %3821 = sst [smem:[#allocation39_spill]] %s3820_s2  ;;  %p2507_p1 = scmp.ne.s32.totalorder %s302_s14, %s2506_s15 }
  0x5b   : > { %p2219_p8 = pnand %p2218_p7, %p3770_p5  ;;  %p2514_p9 = scmp.lt.s32.totalorder %s302_s14, %s302_s14 }
  0x5c   : > { %p2515_p4 = scmp.lt.s32.totalorder %s2506_s15, %s2506_s15 }
  0x5d   : > { %p2497_p10 = pneg %p2219_p8 }
  0x5e   : > { %p2516_p12 = por %p2515_p4, %p2514_p9 }
  0x5f   : > { %p2509_p0 = pnand %p2507_p1, %p2497_p10 }
  0x61   : > { %p2510_p6 = pneg %p2509_p0 }
  0x63   : > { %p2517_p3 = pnand %p2516_p12, %p2510_p6 }
  0x65   : > { %2520 = shalt.err (!%p2517_p3)
}
  0x66   : > { %s3823_s27 = smov 8   ;;  %s3824_s26 = smov 128  }
  0x67   : > { %s3825_s5 = sld [smem:[#allocation53_spill]]  ;;  %s3769_s4 = sadd.s32 4294967294, %s2817_s18  }
  0x68   : > { %s47_s25 = sadd.s32 1, %s2813_s17  ;;  %s54_s1 = sadd.s32 1, %s2797_s13 }
  0x69   : > { %s3905_s25 = smov (!%p3000_p13, %s47_s25), %s2813_s17  ;;  %p61_p0 = scmp.ne.s32.totalorder %s2797_s13, %s2793_s12 }
  0x6a   : > { %p67_p1 = scmp.ne.s32.totalorder %s2793_s12, %s2789_s11  ;;  %p49_p4 = scmp.ge.s32.totalorder %s3905_s25, 2 }
  0x6b   : > { %p3771_p9 = scmp.ne.s32.totalorder %s2781_s9, %s2777_s30  ;;  %p3826_p10 = scmp.eq.s32.totalorder %s2817_s18, 0 }
  0x6c   : > { %p3106_p13 = por %p3770_p5, %p67_p1  ;;  %s3907_s25 = smov (%p49_p4, %s3905_s25), 0 }
  0x6d   : > { %2221 = dma.hbm_to_vmem [thread:$0]  (!%p2219_p8), %s3825_s5, 768, %s302_s14, [#allocation14], %s3824_s26, %s3824_s26, %s3823_s27  }
  0x6e   : > { %p3097_p11 = por %p3826_p10, %p61_p0  ;;  %3829 = sst [smem:[#allocation40_spill]] %s3907_s25 }
  0x6f   : > { %p3117_p12 = por %p3771_p9, %p3770_p5  ;;  %p220_p7 = scmp.eq.s32.totalorder %s3052_s24, 3 }
  0x70   : > { %s51_s6 = ssub.s32 %s2813_s17, %s3907_s25  ;;  %p226_p8 = scmp.eq.s32.totalorder %s3769_s4, 3 }
  0x71   : > { %s3830_s15 = scalar_select %p3117_p12, 1, 0 }
  0x72   : > { %p52_p6 = scmp.eq.s32.totalorder %s51_s6, 0  ;;  %s79_s20 = sor.u32 %s3017_s21, %s51_s6 }
  0x73   : > { %3831 = sst [smem:[#allocation41_spill]] %s3830_s15  ;;  %p80_p3 = scmp.eq.s32.totalorder %s79_s20, 0 }
  0x74   : > { %p3130_p4 = por %p220_p7, %p61_p0  ;;  %s3835_s29 = sadd.s32 1, %s2785_s10 }
  0x75   : > { %s3135_s5 = scalar_select %p52_p6, %s2797_s13, %s54_s1  }
  0x76   : > { %s3832_s3 = scalar_select %p3130_p4, 1, 0 }
  0x77   : > { %3834 = sst [smem:[#allocation43_spill]] %s3135_s5  ;;  %p3145_p10 = por %p226_p8, %p67_p1 }
  0x78   : > { %3833 = sst [smem:[#allocation42_spill]] %s3832_s3  ;;  %p3839_p5 = scmp.ne.s32.totalorder %s2785_s10, %s2781_s9 }
  0x79   : > { %s3140_s2 = scalar_select %p80_p3, %s2785_s10, %s3835_s29  }
  0x7a   : > { %s3837_s4 = scalar_select %p3145_p10, 1, 0 }
  0x7b   : > { %3836 = sst [smem:[#allocation44_spill]] %s3140_s2  ;;  %p3152_p9 = por %p220_p7, %p3839_p5 }
  0x7c   : > { %3838 = sst [smem:[#allocation45_spill]] %s3837_s4  ;;  %p3842_p12 = scmp.ne.s32.totalorder %s2781_s9, %s2777_s30 }
  0x7d   : > { %s3840_s21 = scalar_select %p3152_p9, 1, 0 }
  0x7e   : > { %p3159_p0 = por %p226_p8, %p3842_p12  ;;  %s315_s1 = sand.u32 1, %s2797_s13  }
  0x7f   : > { %3841 = sst [smem:[#allocation46_spill]] %s3840_s21  ;;  %s2055_s20 = sshll.u32 %s315_s1, 3 }
  0x80   : > { %s3843_s6 = scalar_select %p3159_p0, 1, 0 }
  0x81   : > { %s2056_s25 = sshll.u32 %s2813_s17, 7  ;;  %s3845_s0 = sld [smem:[#allocation48_spill]] }
  0x82   : > { %3844 = sst [smem:[#allocation47_spill]] %s3843_s6  ;;  %s319_s11 = scalar_lea.vmem [#allocation4], %s2055_s20 }
  0x83   : > { %s326_s3 = sshll.u32 %s319_s11, 4  ;;  %p3846_p5 = scmp.lt.s32.totalorder %s2817_s18, 4  ;;  %s327_s3 = int_to_ptr.vmem [resolvable:$true] %s326_s3 }
  0x84   : > { %s3848_s30 = sand.u32 1, %s2785_s10   ;;  %s2121_s6 = sshll.u32 %s2813_s17, 4 }
  0x85   : > { %p3172_p1 = pnand %p3846_p5, %p3097_p11  ;;  %s2060_s21 = sshll.u32 %s3848_s30, 7 }
  0x86   : > { %s316_s13 = scalar_lea.sflag [#allocation5], %s315_s1  ;;  %s2534_s28 = scalar_lea.vmem %s327_s3, 128 }
  0x87   : > { %s324_s2 = scalar_lea.hbm %s3845_s0, %s2056_s25  ;;  %p2523_p12 = pneg %p3172_p1 }
  0x88   : > { %p2535_p7 = scmp.ne.s32.totalorder %s327_s3, %s2534_s28  ;;  %s2827_s5 = smov [#allocation4]  }
  0x89   : > { %s2539_s11 = sshll.u32 %s2827_s5, 4  ;;  %s2540_s11 = int_to_ptr.vmem [resolvable:$false] %s2539_s11 }
  0x8a   : > { %p2537_p8 = pnand %p2535_p7, %p2523_p12  ;;  %s2541_s25 = scalar_lea.vmem %s2540_s11, 256 }
  0x8b   : > { %p2542_p3 = scmp.lt.s32.totalorder %s327_s3, %s2540_s11  ;;  %p2543_p11 = scmp.lt.s32.totalorder %s2541_s25, %s2534_s28 }
  0x8c   : > { %p2538_p6 = pneg %p2537_p8 }
  0x8d   : > { %p2544_p5 = por %p2543_p11, %p2542_p3 }
  0x8f   : > { %p2545_p0 = pnand %p2544_p5, %p2538_p6 }
  0x91   : > { %2548 = shalt.err (!%p2545_p0)
}
  0x92   : > { %s3849_s7 = sld [smem:[#allocation35_spill]]  ;;  %s2063_s1 = sshll.u32 %s2809_s16, 5 }
  0x93   : > { %2225 = dma.hbm_to_vmem [thread:$0]  (!%p3172_p1), %s324_s2, 128, %s327_s3, %s316_s13  }
  0x94   : > { %s359_s20 = scalar_lea.vmem [#allocation9], %s2060_s21  ;;  %s366_s30 = sadd.s32 %s2121_s6, %s2063_s1 }
  0x95   : > { %s369_s29 = sshll.u32 %s359_s20, 4  ;;  %s2064_s0 = sshll.u32 %s366_s30, 7  ;;  %s370_s29 = int_to_ptr.vmem [resolvable:$true] %s369_s29 }
  0x96   : > { %s2122_s5 = sshll.u32 %s2809_s16, 9  ;;  %s3850_s11 = sld [smem:[#allocation50_spill]] }
  0x97   : > { %s3851_s15 = sld [smem:[#allocation52_spill]]  ;;  %s2562_s4 = scalar_lea.vmem %s370_s29, 2048 }
  0x98   : > { %p2563_p0 = scmp.ne.s32.totalorder %s370_s29, %s2562_s4  ;;  %p3852_p12 = scmp.ne.s32.totalorder %s3849_s7, 0 }
  0x99   : > { %s2828_s3 = smov [#allocation9]  }
  0x9a   : > { %p3853_p1 = pneg %p3852_p12  ;;  %s2567_s13 = sshll.u32 %s2828_s3, 4  ;;  %s2568_s13 = int_to_ptr.vmem [resolvable:$false] %s2567_s13 }
  0x9b   : > { %s2569_s2 = scalar_lea.vmem %s2568_s13, 4096  ;;  %p2570_p6 = scmp.lt.s32.totalorder %s370_s29, %s2568_s13 }
  0x9c   : > { %s368_s28 = scalar_lea.hbm %s3850_s11, %s2064_s0  ;;  %p2565_p7 = pnand %p2563_p0, %p3853_p1 }
  0x9d   : > { %s3191_s9 = scalar_lea.hbm %s3851_s15, %s2122_s5  ;;  %p2571_p3 = scmp.lt.s32.totalorder %s2569_s2, %s2562_s4 }
  0x9e   : > { %p2566_p8 = pneg %p2565_p7 }
  0x9f   : > { %p2572_p11 = por %p2571_p3, %p2570_p6 }
  0xa1   : > { %p2573_p5 = pnand %p2572_p11, %p2566_p8 }
  0xa3   : > { %2576 = shalt.err (!%p2573_p5)
}
  0xa4   : > { %s3854_s0 = sld [smem:[#allocation36_spill]]  ;;  %s404_s10 = scalar_lea.vmem [#allocation12], %s3049_s22 }
  0xa5   : > { %s411_s17 = sshll.u32 %s404_s10, 4  ;;  %p3855_p1 = scmp.ne.s32.totalorder %s3815_s23, 0  ;;  %s412_s17 = int_to_ptr.vmem [resolvable:$true] %s411_s17 }
  0xa6   : > { %s2590_s18 = scalar_lea.vmem %s412_s17, 512  ;;  %s2829_s15 = smov [#allocation12]  }
  0xa7   : > { %p2591_p0 = scmp.ne.s32.totalorder %s412_s17, %s2590_s18  ;;  %p3856_p7 = pneg %p3855_p1 }
  0xa8   : > { %s2595_s21 = sshll.u32 %s2829_s15, 4  ;;  %s2596_s21 = int_to_ptr.vmem [resolvable:$false] %s2595_s21 }
  0xa9   : > { %p2593_p10 = pnand %p2591_p0, %p3856_p7  ;;  %s2597_s6 = scalar_lea.vmem %s2596_s21, 1024 }
  0xaa   : > { %2231 = dma.hbm_to_vmem [thread:$0]  (!%p3852_p12), %s368_s28, 2048, %s370_s29, %s3854_s0, %s3824_s26, %s3824_s26, %s3823_s27  }
  0xab   : > { %p2594_p6 = pneg %p2593_p10  ;;  %p2598_p8 = scmp.lt.s32.totalorder %s412_s17, %s2596_s21 }
  0xac   : > { %p2599_p3 = scmp.lt.s32.totalorder %s2597_s6, %s2590_s18 }
  0xae   : > { %p2600_p11 = por %p2599_p3, %p2598_p8 }
  0xb0   : > { %p2601_p5 = pnand %p2600_p11, %p2594_p6 }
  0xb2   : > { %2604 = shalt.err (!%p2601_p5)
}
  0xb3   : > { %2237 = dma.hbm_to_vmem [thread:$0]  (!%p3855_p1), %s3191_s9, 512, %s412_s17, %s3037_s8, %s3824_s26, %s3824_s26, %s3823_s27  }
  0xb4   : > { %423 = sbr.rel (%p3066_p2) target bundleno = 2192 (0x890), region = 44  ;;  %s3216_s22 = sand.u32 (!%p3066_p2), 1, %s2793_s12  }
  0xb5   : > { %s2070_s7 = sshll.u32 (!%p3066_p2), %s3216_s22, 3  ;;  %s426_s1 = scalar_lea.sflag (!%p3066_p2), [#allocation5], %s3216_s22 }
  0xb6   : > { %s3220_s20 = scalar_lea.vmem (!%p3066_p2), [#allocation4], %s2070_s7 }
  0xb9   : > { %2740 = dma.done.wait (%p3106_p13), %s426_s1, 128  }
  0xba   : > { %2742 = vsyncadd (%p3106_p13), %s426_s1, 4294967168  ;;  %s3857_s9 = sld [smem:[#allocation27_spill]]  ;;  %s3227_s23 = sand.u32 1, %s3052_s24  }
  0xbb   : > { %s3858_s8 = sld [smem:[#allocation41_spill]]  ;;  %s435_s26 = scalar_lea.sflag [#allocation8], %s3227_s23 }
  0xc0   : > { %s436_s19 = sand.u32 1, %s3857_s9  }
  0xc1   : > { %s2071_s27 = sshll.u32 %s436_s19, 5  ;;  %p3859_p2 = scmp.ne.s32.totalorder %s3858_s8, 0 }
  0xc2   : > { %s3231_s29 = scalar_lea.vmem [#allocation7], %s2071_s27 }
  0xc3   : > { %2744 = dma.done.wait (%p3859_p2), %s435_s26, 2560  }
  0xc4   : > { %2746 = vsyncadd (%p3859_p2), %s435_s26, 4294964736  ;;  %s3860_s30 = sld [smem:[#allocation25_spill]]  ;;  %s2072_s5 = sshll.u32 %s436_s19, 7 }
  0xc5   : > { %s3861_s14 = sld [smem:[#allocation39_spill]]  ;;  %s3238_s25 = scalar_lea.vmem [#allocation9], %s2072_s5 }
  0xc6   : > { %s453_s4 = scalar_lea.sflag [#allocation11], %s3227_s23 }
  0xca   : > { %s454_s11 = sand.u32 1, %s3860_s30  }
  0xcb   : > { %s2197_s28 = smul.u32 80, %s454_s11  ;;  %p3862_p13 = scmp.ne.s32.totalorder %s3861_s14, 0 }
  0xcd   : > { %s3241_s3 = scalar_lea.vmem [#allocation10], %s2197_s28 }
  0xce   : > { %2748 = dma.done.wait (%p3862_p13), %s453_s4, 1792  }
  0xcf   : > { %2750 = vsyncadd (%p3862_p13), %s453_s4, 4294965504  ;;  %s2073_s13 = sshll.u32 %s454_s11, 5  ;;  %p3863_p10 = scmp.eq.s32.totalorder %s3052_s24, 0 }
  0xd0   : > { %s3247_s2 = scalar_lea.vmem [#allocation12], %s2073_s13 }
  0xd1   : > { %2752 = dma.done.wait (%p3863_p10), [#allocation14], 768   ;;  %p3864_p12 = pmov %p3863_p10 }
  0xd2   : > { %s3253_s0 = scalar_lea.vmem [#allocation15], %s2070_s7  ;;  %s3255_s10 = scalar_lea.vmem [#allocation16], %s2071_s27 }
  0xd3   : > { %2754 = vsyncadd (%p3864_p12), [#allocation14], 4294966528  ;;  %s3257_s17 = scalar_lea.vmem [#allocation18], %s2072_s5  ;;  %s3865_s18 = sld [smem:[#allocation31_spill]] }
  0xd9   : > { %p2078_p0 = scmp.ne.s32.totalorder %s3865_s18, 0 }
  0xdb   : > { %538 = sbr.rel (%p2078_p0) target bundleno = 425 (0x1a9), region = 72 }
  0xe0   : > { %v541_v0 = vld [vmem:[#allocation13 + $0x28] sm:$0xf]  ;;  %vm551_vm0 = vcmask 1043456   ;;  %v2830_v1 = vmov 0.0   ;;  %v540_v2 = vld [vmem:[#allocation13 + $0x20] sm:$0xff]  ;;  %vm2831_vm1 = vmmov 0  }
  0xe1   : > { %2145 = vmatprep.subr.mxu0 %v2830_v1  ;;  %2149 = vmatprep.mubr.msk.f32.mxu0 %vm2831_vm1, %v2830_v1  ;;  %v539_v3 = vld [vmem:[%s3220_s20] sm:$0xff]  ;;  %vm547_vm2 = vcmask 97280   ;;  %v2079_v4 = vld [vmem:[#allocation13 + $0x2c] ss:$0 sm:$0xff]  ;;  %vm625_vm3 = vcmask 261120  }
  0xe2   : > { %2146 = vmatpush3.msk.msra.mxu0 %vm551_vm0, %v541_v0 }
  0xe3   : > { %2147 = vmatprep.subr.mxu0 %v2830_v1 }
  0xe4   : > { %2148 = vmatpush3.msra.mxu0 %v540_v2 }
  0xe5   : > { %2150 = vmatmul.mubr.msk.f32.vlgmr.msra.gmra.mxu0 %vm547_vm2, %v539_v3 }
 0x1a5   : > { %v621_v5 = vpop.f32.mrf.mxu0 }
 0x1a6   : > { %v622_v6 = vadd.f32 %v2079_v4, %v621_v5 }
 0x1a7   : > { %v2151_v7 = vpop.f32.mrf.mxu0 }
 0x1a8   : > { %626 = vst.msk [vmem:[#allocation3] sm:$0xff] %vm625_vm3, %v622_v6 }
 0x1a9 PF: > { %s3866_s24 = sld [smem:[#allocation31_spill]] }
 0x1af   : > { %p2082_p1 = scmp.le.s32.totalorder %s3866_s24, 0 }
 0x1b1   : > { %630 = sbr.rel (%p2082_p1) target bundleno = 442 (0x1ba), region = 76 }
 0x1b6   : > { %v631_v8 = vld [vmem:[#allocation3] sm:$0xff]  ;;  %v632_v9 = vld [vmem:[#allocation2] sm:$0xff]  ;;  %vm634_vm4 = vcmask 261120  }
 0x1b7   : > { %v633_v10 = vadd.f32 %v632_v9, %v631_v8 }
 0x1b9   : > { %635 = vst.msk [vmem:[#allocation3] sm:$0xff] %vm634_vm4, %v633_v10 }
 0x1ba PF: > { %vm639_vm5 = vcmask 261120   ;;  %v2381_v18 = vld [vmem:[%s3241_s3 + $0x8] sm:$0xff]   ;;  %v2832_v19 = vmov 0.0   ;;  %vm2833_vm6 = vmmov 0   ;;  %v2382_v20 = vld [vmem:[%s3241_s3] sm:$0xff]   ;;  %vm757_vm7 = vcmask 523264  }
 0x1bb   : > { %2152 = vmatprep.subr.bf16.mxu0 %v2832_v19  ;;  %2156 = vmatprep.mubr.msk.bf16.mxu0 %vm2833_vm6, %v2832_v19  ;;  %v2083_v25 = vld [vmem:[%s3247_s2 + $0x17] ss:$0 sm:$0xff]  ;;  %v2084_v27 = vld [vmem:[%s3247_s2 + $0x18] ss:$0 sm:$0xff]  ;;  %v726_v31 = vld [vmem:[%s3231_s29 + $0x8] sm:$0xff]  ;;  %v729_v38 = vlaneseq  ;;  %s2834_s15 = smov 64  }
 0x1bc   : > { %2153 = vmatpush3.bf16.msra.mxu0 %v2381_v18  ;;  %2160 = vmatprep.subr.bf16.mxu1 %v2832_v19  ;;  %v727_v32 = vld [vmem:[%s3231_s29 + $0x10] sm:$0xff]  ;;  %v728_v33 = vld [vmem:[%s3231_s29 + $0x18] sm:$0xff]  ;;  %758 = vst.msk [vmem:[%s3255_s10] sm:$0xff] %vm757_vm7, %v726_v31  ;;  %vm1539_vm10 = vcmask 1041409   ;;  %vm1542_vm11 = vcmask 1042434   ;;  %vm1545_vm12 = vcmask 1043459  }
 0x1bd   : > { %2154 = vmatprep.subr.bf16.mxu0 %v2832_v19  ;;  %2168 = vmatprep.mubr.msk.bf16.mxu1 %vm2833_vm6, %v2832_v19  ;;  %759 = vst.msk [vmem:[%s3255_s10 + $0x8] sm:$0xff] %vm757_vm7, %v727_v32  ;;  %760 = vst.msk [vmem:[%s3255_s10 + $0x10] sm:$0xff] %vm757_vm7, %v728_v33  ;;  %v2383_v34 = vld [vmem:[%s3241_s3 + $0x28] sm:$0xff]   ;;  %v2384_v35 = vld [vmem:[%s3241_s3 + $0x20] sm:$0xff]   ;;  %v3295_v39 = vshrl.u32 %v729_v38, 7  ;;  %vm1548_vm13 = vcmask 1044484  }
 0x1be   : > { %2161 = vmatpush3.bf16.msra.mxu1 %v2383_v34  ;;  %v2385_v36 = vld [vmem:[%s3241_s3 + $0x18] sm:$0xff]   ;;  %v2386_v37 = vld [vmem:[%s3241_s3 + $0x10] sm:$0xff]   ;;  %vm1551_vm14 = vcmask 1045509   ;;  %vm1554_vm15 = vcmask 1046534   ;;  %vm1557_vm0 = vcmask 1047559   ;;  %s3867_s21 = sld [smem:[#allocation31_spill]] }
 0x1bf   : > { %2162 = vmatprep.subr.bf16.mxu1 %v2832_v19  ;;  %v731_v40 = vsub.s32 3, %v3295_v39  ;;  %v3299_v41 = vsub.s32 0, %v3295_v39  ;;  %v724_v42 = vld [vmem:[%s3247_s2 + $0x10] sm:$0xf]  ;;  %v747_v43 = vsub.s32 1, %v3295_v39  ;;  %v753_v46 = vsub.s32 2, %v3295_v39 }
 0x1c0   : > { %v636_v11 = vld [vmem:[#allocation3] sm:$0xff]  ;;  %2155 = vmatpush3.bf16.msra.mxu0 %v2382_v20  ;;  %v2088_v49 = vld [vmem:[%s3247_s2 + $0x14] ss:$0 sm:$0xff]  ;;  %v1143_v7 = vsub.s32 4, %v3295_v39  ;;  %v1167_v18 = vsub.s32 6, %v3295_v39 }
 0x1c1   : > { %v640_v12 = vsel %vm639_vm5, %v636_v11, 0.0  ;;  %2172 = vmatprep.subr.bf16.mxu0 %v2832_v19  ;;  %v732_v44 = vrot.slane %v724_v42, %v731_v40  ;;  %v742_v45 = vrot.slane %v724_v42, %v3299_v41  ;;  %v748_v47 = vrot.slane %v724_v42, %v747_v43 }
 0x1c2   : > { %641 = vadd.xlane.f32.xlu0 %v640_v12  ;;  %2163 = vmatpush3.bf16.msra.mxu1 %v2384_v35  ;;  %v754_v52 = vrot.slane %v724_v42, %v753_v46 }
 0x1c3   : > { %2164 = vmatprep.subr.bf16.mxu1 %v2832_v19  ;;  %v743_v51 = vmul.f32 %v742_v45, %v726_v31  ;;  %v749_v55 = vmul.f32 %v748_v47, %v727_v32 }
 0x1c4   : > { %v755_v58 = vmul.f32 %v754_v52, %v728_v33  ;;  %p2104_p7 = scmp.ne.s32.totalorder %s3867_s21, 1 }
 0x1c6   : > { %2165 = vmatpush3.bf16.msra.mxu1 %v2385_v36 }
 0x1c7   : > { %2166 = vmatprep.subr.bf16.mxu1 %v2832_v19 }
 0x1ca   : > { %2167 = vmatpush3.bf16.msra.mxu1 %v2386_v37 }
 0x24b   : > { %v642_v13 = vpop.xlane.xlu0 %641 }
 0x24c   : > { %v644_v14 = vmul.f32 0.03125, %v642_v13  ;;  %v2096_v13 = vld [vmem:[%s3247_s2 + $0x15] ss:$0 sm:$0xff] }
 0x24e   : > { %v645_v15 = vsub.f32 %v636_v11, %v644_v14  ;;  %v1155_v11 = vsub.s32 5, %v3295_v39 }
 0x250   : > { %v646_v16 = vmul.f32 %v645_v15, %v645_v15 }
 0x252   : > { %v647_v17 = vsel %vm639_vm5, %v646_v16, 0.0 }
 0x253   : > { %648 = vadd.xlane.f32.xlu0 %v647_v17 }
 0x2dc   : > { %v649_v21 = vpop.xlane.xlu0 %648 }
 0x2dd   : > { %v650_v22 = vmul.f32 0.03125, %v649_v21 }
 0x2df   : > { %v651_v23 = vadd.f32 1e-05, %v650_v22 }
 0x2e1   : > { %2391 = vrsqrt.f32 %v651_v23 }
 0x2ee   : > { %v2392_v24 = vpop.eup %2391 }
 0x2ef   : > { %v653_v26 = vmul.f32 %v2392_v24, %v645_v15  ;;  %v1179_v24 = vsub.s32 7, %v3295_v39 }
 0x2f1   : > { %v658_v28 = vmul.f32 %v2083_v25, %v653_v26 }
 0x2f3   : > { %v663_v29 = vadd.f32 %v2084_v27, %v658_v28 }
 0x2f5   : > { %v668_v30 = vpack.c.bf16 %v663_v29, %v663_v29 }
 0x2f7   : > { %2157 = vmatmul.mubr.msk.bf16.vlgmr.msra.gmra.mxu0 %vm639_vm5, %v668_v30 }
 0x2f8   : > { %2180 = vmatprep.mubr.msk.bf16.mxu0 %vm2833_vm6, %v2832_v19 }
 0x3b7   : > { %v3305_v48 = vpop.f32.mrf.mxu0 }
 0x3b8   : > { %v733_v50 = vmul.f32 %v732_v44, %v3305_v48  ;;  %2089 = vst.msk [vmem:[%s3255_s10 + $0x18] sm:$0xff] %vm757_vm7, %v3305_v48  ;;  %v2098_v14 = vmul.f32 -1.442695, %v3305_v48  ;;  %v2835_v44 = vmov 1966171168  }
 0x3b9   : > { %v2158_v53 = vpop.f32.mrf.mxu0  ;;  %v891_v45 = vunpack.c.l.s4 %v2835_v44 }
 0x3ba   : > { %v738_v54 = vadd.f32 %v2088_v49, %v733_v50 }
 0x3bb   : > { %v721_v56 = vpop.f32.mrf.mxu0  ;;  %v892_v49 = vunpack.c.0.s8 %v891_v45 }
 0x3bc   : > { %v744_v57 = vadd.f32 %v743_v51, %v738_v54 }
 0x3bd   : > { %v2159_v59 = vpop.f32.mrf.mxu0  ;;  %v3340_v51 = vsub.s32 %v892_v49, %v3295_v39  ;;  %v2387_v39 = vld [vmem:[%s3241_s3 + $0x48] sm:$0xff]  }
 0x3be   : > { %v750_v60 = vadd.f32 %v749_v55, %v744_v57  ;;  %2173 = vmatpush3.bf16.msra.mxu0 %v2387_v39 }
 0x3bf   : > { %2174 = vmatprep.subr.bf16.mxu0 %v2832_v19 }
 0x3c0   : > { %v756_v61 = vadd.f32 %v755_v58, %v750_v60 }
 0x3c2   : > { %v2090_v62 = vmul.f32 -1.442695, %v756_v61 }
 0x3c4   : > { %2393 = vpow2.f32 %v2090_v62 }
 0x3d1   : > { %v2394_v63 = vpop.eup %2393 }
 0x3d2   : > { %v766_v0 = vadd.f32 1.0, %v2394_v63 }
 0x3d4   : > { %2395 = vrcp.f32 %v766_v0 }
 0x3d5   : > { %2397 = vpow2.f32 %v2098_v14 }
 0x3e1   : > { %v2396_v1 = vpop.eup %2395 }
 0x3e2   : > { %v3312_v2 = vmul.f32 %v2396_v1, %v756_v61  ;;  %v2398_v27 = vpop.eup %2397 }
 0x3e3   : > { %v1462_v28 = vadd.f32 1.0, %v2398_v27 }
 0x3e4   : > { %v779_v3 = vpack.c.bf16 %v3312_v2, %v3312_v2 }
 0x3e6   : > { %2169 = vmatmul.mubr.msk.bf16.vlgmr.msra.gmra.mxu1 %vm757_vm7, %v779_v3 }
 0x4a6   : > { %v841_v4 = vpop.f32.mrf.mxu1 }
 0x4a7   : > { %v1120_v5 = vrot.slane %v841_v4, %v753_v46  ;;  %v1108_v6 = vrot.slane %v841_v4, %v747_v43  ;;  %v1144_v10 = vrot.slane %v841_v4, %v1143_v7  ;;  %v3321_v15 = vrot.slane %v841_v4, %v1155_v11  ;;  %v871_v11 = vld [vmem:[%s3247_s2 + $0x8] sm:$0xff] }
 0x4a8   : > { %v2170_v8 = vpop.f32.mrf.mxu1  ;;  %v3323_v16 = vadd.f32 %v2096_v13, %v841_v4  ;;  %v1096_v17 = vrot.slane %v841_v4, %v3299_v41  ;;  %v1168_v21 = vrot.slane %v841_v4, %v1167_v18  ;;  %v1132_v23 = vrot.slane %v841_v4, %v731_v40 }
 0x4a9   : > { %1123 = vbcast.lane.b32.xlu0 %v1120_v5, 320  ;;  %1111 = vbcast.lane.b32.xlu1 %v1108_v6, 320  ;;  %v1180_v26 = vrot.slane %v841_v4, %v1179_v24  ;;  %v2388_v4 = vld [vmem:[%s3241_s3 + $0x40] sm:$0xff]  }
 0x4aa   : > { %v844_v9 = vpop.f32.mrf.mxu1  ;;  %v855_v20 = vand.u32 2147483647, %v3323_v16  ;;  %vm853_vm9 = vcmp.ne.f32.partialorder %v3323_v16, %v3323_v16  ;;  %2175 = vmatpush3.bf16.msra.mxu0 %v2388_v4 }
 0x4ab   : > { %2176 = vmatprep.subr.bf16.mxu0 %v2832_v19 }
 0x4ac   : > { %v2171_v12 = vpop.f32.mrf.mxu1  ;;  %v856_v22 = vsub.f32 0.0, %v855_v20 }
 0x4ad   : > { %1151 = vbcast.lane.b32.xlu0 %v1144_v10, 328  ;;  %1115 = vbcast.lane.b32.xlu1 %v1108_v6, 328  ;;  %v2390_v12 = vld [vmem:[%s3241_s3 + $0x30] sm:$0xff]  }
 0x4ae   : > { %v857_v25 = vmul.f32 1.442695, %v856_v22 }
 0x4b0   : > { %2399 = vpow2.f32 %v857_v25 }
 0x4b1   : > { %1163 = vbcast.lane.b32.xlu0 %v3321_v15, 328  ;;  %1127 = vbcast.lane.b32.xlu1 %v1120_v5, 328  ;;  %2401 = vrcp.f32 %v1462_v28 }
 0x4b5   : > { %1291 = vbcast.lane.b32.xlu0 %v1108_v6, 344  ;;  %1099 = vbcast.lane.b32.xlu1 %v1096_v17, 320 }
 0x4b9   : > { %1175 = vbcast.lane.b32.xlu0 %v1168_v21, 328  ;;  %1103 = vbcast.lane.b32.xlu1 %v1096_v17, 328 }
 0x4bd   : > { %1299 = vbcast.lane.b32.xlu0 %v1120_v5, 344  ;;  %1135 = vbcast.lane.b32.xlu1 %v1132_v23, 320  ;;  %v2400_v29 = vpop.eup %2399 }
 0x4be   : > { %v859_v30 = vadd.f32 1.0, %v2400_v29  ;;  %v2402_v31 = vpop.eup %2401  ;;  %v862_v35 = vmul.f32 -0.5, %v2400_v29  ;;  %v865_v40 = vand.u32 2147483647, %v2400_v29 }
 0x4bf   : > { %v1465_v32 = vmul.f32 %v2402_v31, %v3305_v48  ;;  %v852_v48 = vmax.f32 %v3323_v16, 0.0 }
 0x4c0   : > { %2403 = vlog2.f32 %v859_v30  ;;  %v863_v38 = vadd.f32 1.0, %v862_v35  ;;  %vm866_vm8 = vcmp.lt.f32.partialorder %v865_v40, 0.0004427343 }
 0x4c1   : > { %1187 = vbcast.lane.b32.xlu0 %v1180_v26, 328  ;;  %1139 = vbcast.lane.b32.xlu1 %v1132_v23, 328  ;;  %v1468_v33 = vrot.slane %v1465_v32, 2  ;;  %v1469_v34 = vrot.slane %v1465_v32, 3  ;;  %v1471_v37 = vrot.slane %v1465_v32, 5  ;;  %v1473_v43 = vrot.slane %v1465_v32, 7 }
 0x4c2   : > { %v864_v46 = vmul.f32 %v2400_v29, %v863_v38  ;;  %v1467_v53 = vrot.slane %v1465_v32, 1  ;;  %v1470_v58 = vrot.slane %v1465_v32, 4  ;;  %v1472_v62 = vrot.slane %v1465_v32, 6 }
 0x4c5   : > { %1283 = vbcast.lane.b32.xlu0 %v1096_v17, 344  ;;  %1147 = vbcast.lane.b32.xlu1 %v1144_v10, 320 }
 0x4c9   : > { %1307 = vbcast.lane.b32.xlu0 %v1132_v23, 344  ;;  %1159 = vbcast.lane.b32.xlu1 %v3321_v15, 320 }
 0x4cd   : > { %1315 = vbcast.lane.b32.xlu0 %v1144_v10, 344  ;;  %1287 = vbcast.lane.b32.xlu1 %v1108_v6, 336  ;;  %v2404_v36 = vpop.eup %2403  ;;  %v2389_v6 = vld [vmem:[%s3241_s3 + $0x38] sm:$0xff]  }
 0x4ce   : > { %v861_v42 = vmul.f32 0.6931472, %v2404_v36  ;;  %2177 = vmatpush3.bf16.msra.mxu0 %v2389_v6  ;;  %v875_v6 = vld [vmem:[%s3238_s25 + $0x18] sm:$0xff] }
 0x4cf   : > { %2178 = vmatprep.subr.bf16.mxu0 %v2832_v19 }
 0x4d0   : > { %v867_v47 = vsel %vm866_vm8, %v864_v46, %v861_v42 }
 0x4d1   : > { %1323 = vbcast.lane.b32.xlu0 %v3321_v15, 344  ;;  %1171 = vbcast.lane.b32.xlu1 %v1168_v21, 320  ;;  %v868_v50 = vadd.f32 %v867_v47, %v852_v48 }
 0x4d2   : > { %2179 = vmatpush3.bf16.msra.mxu0 %v2390_v12 }
 0x4d3   : > { %v869_v52 = vsel %vm853_vm9, %v3323_v16, %v868_v50 }
 0x4d4   : > { %v896_v54 = vrot.slane %v869_v52, %v3340_v51  ;;  %v889_v56 = vcombine.high %v869_v52, %v869_v52  ;;  %v1042_v18 = vmul.f32 %v869_v52, %v3312_v2 }
 0x4d5   : > { %1331 = vbcast.lane.b32.xlu0 %v1168_v21, 344  ;;  %1295 = vbcast.lane.b32.xlu1 %v1120_v5, 336  ;;  %v3360_v5 = vld [vmem:[%s3247_s2] sm:$0xff] }
 0x4d6   : > { %v904_v55 = vcombine.high %v896_v54, %v896_v54  ;;  %v912_v57 = vrot.slane %v896_v54, %v3340_v51  ;;  %v903_v60 = vrot.slane %v889_v56, %v3340_v51  ;;  %v1051_v19 = vrot.slane %v1042_v18, %v3340_v51  ;;  %v876_v54 = vld [vmem:[%s3238_s25 + $0x20] sm:$0xff] }
 0x4d7   : > { %v1044_v31 = vcombine.high %v1042_v18, %v1042_v18 }
 0x4d8   : > { %v926_v59 = vrot.slane %v904_v55, %v3340_v51  ;;  %v934_v61 = vcombine.high %v912_v57, %v912_v57  ;;  %v905_v0 = vcombine.high %v903_v60, %v903_v60  ;;  %v919_v1 = vrot.slane %v903_v60, %v3340_v51 }
 0x4d9   : > { %1339 = vbcast.lane.b32.xlu0 %v1180_v26, 344  ;;  %1183 = vbcast.lane.b32.xlu1 %v1180_v26, 320  ;;  %v1058_v40 = vrot.slane %v1044_v31, %v3340_v51 }
 0x4da   : > { %v945_v63 = vrot.slane %v926_v59, %v3299_v41  ;;  %v949_v3 = vrot.slane %v934_v61, %v3299_v41  ;;  %v933_v8 = vrot.slane %v905_v0, %v3340_v51  ;;  %v3367_v9 = vrot.slane %v919_v1, %v3299_v41 }
 0x4db   : > { %v935_v20 = vcombine.high %v919_v1, %v919_v1  ;;  %v3401_v50 = vrot.slane %v1058_v40, %v3340_v51  ;;  %v1060_v52 = vcombine.high %v1058_v40, %v1058_v40 }
 0x4dc   : > { %v980_v7 = vmul.f32 %v945_v63, %v3360_v5  ;;  %v981_v13 = vmul.f32 %v945_v63, %v871_v11  ;;  %v3375_v16 = vrot.slane %v933_v8, %v3299_v41  ;;  %v983_v22 = vmul.f32 %v949_v3, %v871_v11 }
 0x4dd   : > { %1478 = vrot.lane.b32.xlu0 %v1468_v33, %s2834_s15  ;;  %1279 = vbcast.lane.b32.xlu1 %v1096_v17, 336  ;;  %v3382_v28 = vrot.slane %v935_v20, %v3299_v41  ;;  %v1059_v33 = vcombine.high %v1051_v19, %v1051_v19  ;;  %v937_v35 = vcombine.high %v933_v8, %v933_v8 }
 0x4de   : > { %v998_v14 = vmul.f32 1.442695, %v980_v7  ;;  %v989_v25 = vmul.f32 %v3375_v16, %v871_v11  ;;  %v1004_v27 = vmul.f32 1.442695, %v983_v22  ;;  %v3411_v4 = vrot.slane %v3401_v50, %v3299_v41  ;;  %v881_v7 = vld [vmem:[%s3238_s25 + $0x48] sm:$0xff] }
 0x4df   : > { %v3397_v46 = vrot.slane %v937_v35, %v3299_v41  ;;  %v3416_v8 = vrot.slane %v1060_v52, %v3340_v51  ;;  %v988_v31 = vmul.f32 %v3375_v16, %v3360_v5  ;;  %v1090_v40 = vcombine.high %v3401_v50, %v3401_v50  ;;  %v873_v50 = vld [vmem:[%s3238_s25 + $0x8] sm:$0xff] }
 0x4e0   : > { %2405 = vpow2.f32 %v998_v14  ;;  %v1016_v29 = vmul.f32 1.442695, %v989_v25  ;;  %v883_v25 = vld [vmem:[%s3238_s25 + $0x58] sm:$0xff] }
 0x4e1   : > { %1480 = vrot.lane.b32.xlu0 %v1469_v34, %s2834_s15  ;;  %1303 = vbcast.lane.b32.xlu1 %v1132_v23, 336  ;;  %v941_v23 = vrot.slane %v912_v57, %v3299_v41 }
 0x4e3   : > { %v978_v30 = vmul.f32 %v941_v23, %v3360_v5  ;;  %v979_v34 = vmul.f32 %v941_v23, %v871_v11 }
 0x4e5   : > { %1484 = vrot.lane.b32.xlu0 %v1471_v37, %s2834_s15  ;;  %1311 = vbcast.lane.b32.xlu1 %v1144_v10, 336  ;;  %v982_v10 = vmul.f32 %v949_v3, %v3360_v5  ;;  %v991_v37 = vmul.f32 %v3382_v28, %v871_v11  ;;  %v994_v38 = vmul.f32 1.442695, %v978_v30  ;;  %v996_v44 = vmul.f32 1.442695, %v979_v34 }
 0x4e7   : > { %v1002_v17 = vmul.f32 1.442695, %v982_v10  ;;  %v1020_v45 = vmul.f32 1.442695, %v991_v37 }
 0x4e9   : > { %1488 = vrot.lane.b32.xlu0 %v1473_v43, %s2834_s15  ;;  %1319 = vbcast.lane.b32.xlu1 %v3321_v15, 336  ;;  %v987_v15 = vmul.f32 %v3367_v9, %v871_v11  ;;  %2407 = vpow2.f32 %v1002_v17  ;;  %v3394_v43 = vrot.slane %v1059_v33, %v3340_v51  ;;  %v986_v17 = vmul.f32 %v3367_v9, %v3360_v5 }
 0x4ea   : > { %v3435_v9 = vrot.slane %v3416_v8, %v3299_v41 }
 0x4eb   : > { %v1012_v24 = vmul.f32 1.442695, %v987_v15  ;;  %v1196_v56 = vrot.slane %v3394_v43, %v3299_v41  ;;  %v1010_v30 = vmul.f32 1.442695, %v986_v17 }
 0x4ed   : > { %1327 = vbcast.lane.b32.xlu1 %v1168_v21, 336  ;;  %v1000_v21 = vmul.f32 1.442695, %v981_v13  ;;  %v2406_v48 = vpop.eup %2405 }
 0x4ef   : > { %2409 = vpow2.f32 %v1000_v21 }
 0x4f0   : > { %2411 = vpow2.f32 %v1012_v24  ;;  %v877_v24 = vld [vmem:[%s3238_s25 + $0x28] sm:$0xff] }
 0x4f1   : > { %1335 = vbcast.lane.b32.xlu1 %v1180_v26, 336  ;;  %v936_v26 = vcombine.high %v926_v59, %v926_v59  ;;  %2413 = vpow2.f32 %v1004_v27  ;;  %v993_v59 = vmul.f32 %v3397_v46, %v871_v11 }
 0x4f2   : > { %2415 = vpow2.f32 %v1016_v29 }
 0x4f3   : > { %v953_v36 = vrot.slane %v936_v26, %v3299_v41  ;;  %2417 = vpow2.f32 %v994_v38  ;;  %v1024_v15 = vmul.f32 1.442695, %v993_v59  ;;  %v872_v38 = vld [vmem:[%s3238_s25] sm:$0xff]  ;;  %v990_v59 = vmul.f32 %v3382_v28, %v3360_v5 }
 0x4f4   : > { %2419 = vpow2.f32 %v996_v44 }
 0x4f5   : > { %1476 = vrot.lane.b32.xlu1 %v1467_v53, %s2834_s15  ;;  %v984_v47 = vmul.f32 %v953_v36, %v3360_v5  ;;  %v874_v53 = vld [vmem:[%s3238_s25 + $0x10] sm:$0xff]  ;;  %v985_v57 = vmul.f32 %v953_v36, %v871_v11  ;;  %2421 = vpow2.f32 %v1020_v45 }
 0x4f6   : > { %v2408_v49 = vpop.eup %2407  ;;  %v1028_v0 = vmul.f32 %v2406_v48, %v874_v53 }
 0x4f7   : > { %v1006_v60 = vmul.f32 1.442695, %v984_v47  ;;  %v1030_v1 = vmul.f32 %v2408_v49, %v876_v54  ;;  %v1008_v10 = vmul.f32 1.442695, %v985_v57  ;;  %v1014_v49 = vmul.f32 1.442695, %v988_v31 }
 0x4f8   : > { %v885_v54 = vld [vmem:[%s3238_s25 + $0x68] sm:$0xff]  ;;  %v880_v31 = vld [vmem:[%s3238_s25 + $0x40] sm:$0xff] }
 0x4f9   : > { %1474 = vrot.lane.b32.xlu1 %v1465_v32, %s2834_s15  ;;  %v3386_v32 = vrot.slane %v1051_v19, %v3340_v51  ;;  %2423 = vpow2.f32 %v1006_v60 }
 0x4fa   : > { %2425 = vpow2.f32 %v1008_v10 }
 0x4fb   : > { %v1089_v42 = vcombine.high %v3386_v32, %v3386_v32  ;;  %2427 = vpow2.f32 %v1024_v15  ;;  %v1192_v16 = vrot.slane %v3386_v32, %v3299_v41 }
 0x4fc   : > { %v2410_v61 = vpop.eup %2409  ;;  %2429 = vpow2.f32 %v1010_v30 }
 0x4fd   : > { %1482 = vrot.lane.b32.xlu1 %v1470_v58, %s2834_s15  ;;  %v1200_v55 = vrot.slane %v1089_v42, %v3299_v41  ;;  %v2412_v3 = vpop.eup %2411  ;;  %v1029_v51 = vmul.f32 %v2410_v61, %v875_v6  ;;  %2431 = vpow2.f32 %v1014_v49 }
 0x4fe   : > { %v2414_v18 = vpop.eup %2413  ;;  %v1035_v22 = vmul.f32 %v2412_v3, %v881_v7  ;;  %v1092_v3 = vcombine.high %v3416_v8, %v3416_v8  ;;  %v879_v8 = vld [vmem:[%s3238_s25 + $0x38] sm:$0xff] }
 0x4ff   : > { %v2416_v23 = vpop.eup %2415  ;;  %v1031_v35 = vmul.f32 %v2414_v18, %v877_v24  ;;  %v992_v24 = vmul.f32 %v3397_v46, %v3360_v5 }
 0x500   : > { %v1037_v36 = vmul.f32 %v2416_v23, %v883_v25  ;;  %v2418_v37 = vpop.eup %2417 }
 0x501   : > { %1486 = vrot.lane.b32.xlu1 %v1472_v62, %s2834_s15  ;;  %v2420_v45 = vpop.eup %2419  ;;  %v1026_v32 = vmul.f32 %v2418_v37, %v872_v38  ;;  %v1022_v46 = vmul.f32 1.442695, %v992_v24  ;;  %v882_v38 = vld [vmem:[%s3238_s25 + $0x50] sm:$0xff] }
 0x502   : > { %v2422_v52 = vpop.eup %2421 }
 0x506   : > { %v2424_v60 = vpop.eup %2423 }
 0x507   : > { %v2426_v7 = vpop.eup %2425 }
 0x508   : > { %v2428_v15 = vpop.eup %2427 }
 0x51b   : > { %v1124_v39 = vpop.permute.xlu0 %1123  ;;  %v1112_v58 = vpop.permute.xlu1 %1111 }
 0x51c   : > { %v1233_v62 = vmul.f32 %v1200_v55, %v1124_v39  ;;  %v1231_v63 = vmul.f32 %v1196_v56, %v1112_v58 }
 0x51e   : > { %v3418_v11 = vadd.f32 %v1231_v63, %v1028_v0  ;;  %v3420_v12 = vadd.f32 %v1233_v62, %v1030_v1  ;;  %v1027_v63 = vmul.f32 %v2420_v45, %v873_v50  ;;  %v1039_v0 = vmul.f32 %v2422_v52, %v885_v54 }
 0x51f   : > { %v1152_v13 = vpop.permute.xlu0 %1151  ;;  %v1116_v14 = vpop.permute.xlu1 %1115 }
 0x520   : > { %v1238_v20 = vmul.f32 %v3411_v4, %v1152_v13  ;;  %v1232_v21 = vmul.f32 %v1196_v56, %v1116_v14  ;;  %1263 = vst.msk [vmem:[%s3257_s17 + $0x10] sm:$0xff] %vm757_vm7, %v3418_v11  ;;  %1265 = vst.msk [vmem:[%s3257_s17 + $0x20] sm:$0xff] %vm757_vm7, %v3420_v12  ;;  %v1091_v56 = vcombine.high %v3394_v43, %v3394_v43  ;;  %v878_v43 = vld [vmem:[%s3238_s25 + $0x30] sm:$0xff]  ;;  %v1018_v14 = vmul.f32 1.442695, %v990_v59 }
 0x521   : > { %v1032_v18 = vmul.f32 %v2424_v60, %v878_v43 }
 0x522   : > { %v3437_v19 = vadd.f32 %v1232_v21, %v1029_v51  ;;  %v3439_v26 = vadd.f32 %v1238_v20, %v1035_v22  ;;  %v1204_v1 = vrot.slane %v1091_v56, %v3299_v41  ;;  %v887_v20 = vld [vmem:[%s3238_s25 + $0x78] sm:$0xff]  ;;  %v1220_v21 = vrot.slane %v1092_v3, %v3299_v41 }
 0x523   : > { %v1164_v27 = vpop.permute.xlu0 %1163  ;;  %v1128_v29 = vpop.permute.xlu1 %1127  ;;  %2433 = vpow2.f32 %v1018_v14  ;;  %v1041_v30 = vmul.f32 %v2428_v15, %v887_v20 }
 0x524   : > { %v1240_v33 = vmul.f32 %v3435_v9, %v1164_v27  ;;  %v1234_v34 = vmul.f32 %v1200_v55, %v1128_v29  ;;  %1264 = vst.msk [vmem:[%s3257_s17 + $0x18] sm:$0xff] %vm757_vm7, %v3437_v19  ;;  %1270 = vst.msk [vmem:[%s3257_s17 + $0x48] sm:$0xff] %vm757_vm7, %v3439_v26  ;;  %v3470_v55 = vrot.slane %v1090_v40, %v3299_v41  ;;  %v2430_v41 = vpop.eup %2429  ;;  %2435 = vpow2.f32 %v1022_v46 }
 0x525   : > { %v1033_v29 = vmul.f32 %v2426_v7, %v879_v8  ;;  %v1034_v5 = vmul.f32 %v2430_v41, %v880_v31 }
 0x526   : > { %v3455_v42 = vadd.f32 %v1234_v34, %v1031_v35  ;;  %v3457_v44 = vadd.f32 %v1240_v33, %v1037_v36  ;;  %v2432_v36 = vpop.eup %2431 }
 0x527   : > { %v3459_v47 = vpop.permute.xlu0 %1291  ;;  %v1100_v48 = vpop.permute.xlu1 %1099 }
 0x528   : > { %v1229_v53 = vmul.f32 %v1192_v16, %v1100_v48  ;;  %1266 = vst.msk [vmem:[%s3257_s17 + $0x28] sm:$0xff] %vm757_vm7, %v3455_v42  ;;  %1272 = vst.msk [vmem:[%s3257_s17 + $0x58] sm:$0xff] %vm757_vm7, %v3457_v44  ;;  %v1036_v48 = vmul.f32 %v2432_v36, %v882_v38 }
 0x52a   : > { %v3474_v57 = vadd.f32 %v1229_v53, %v1026_v32  ;;  %v884_v32 = vld [vmem:[%s3238_s25 + $0x60] sm:$0xff] }
 0x52b   : > { %v1176_v39 = vpop.permute.xlu0 %1175  ;;  %v1104_v58 = vpop.permute.xlu1 %1103 }
 0x52c   : > { %v1242_v61 = vmul.f32 %v3470_v55, %v1176_v39  ;;  %v1230_v62 = vmul.f32 %v1192_v16, %v1104_v58  ;;  %1261 = vst.msk [vmem:[%s3257_s17] sm:$0xff] %vm757_vm7, %v3474_v57  ;;  %v1344_v58 = vmul.f32 %v3459_v47, %v3437_v19 }
 0x52e   : > { %v3486_v28 = vadd.f32 %v1230_v62, %v1027_v63  ;;  %v3488_v6 = vadd.f32 %v1242_v61, %v1039_v0  ;;  %v1367_v0 = vsel %vm757_vm7, %v1344_v58, 0.0 }
 0x52f   : > { %v1300_v10 = vpop.permute.xlu0 %1299  ;;  %v1136_v13 = vpop.permute.xlu1 %1135 }
 0x530   : > { %v1235_v17 = vmul.f32 %v1204_v1, %v1136_v13  ;;  %1262 = vst.msk [vmem:[%s3257_s17 + $0x8] sm:$0xff] %vm757_vm7, %v3486_v28  ;;  %1274 = vst.msk [vmem:[%s3257_s17 + $0x68] sm:$0xff] %vm757_vm7, %v3488_v6  ;;  %v2434_v53 = vpop.eup %2433  ;;  %v1346_v59 = vmul.f32 %v1300_v10, %v3455_v42 }
 0x531   : > { %v1038_v39 = vmul.f32 %v2434_v53, %v884_v32 }
 0x532   : > { %v3499_v51 = vadd.f32 %v1235_v17, %v1032_v18  ;;  %v1376_v43 = vsel %vm757_vm7, %v1346_v59, 0.0 }
 0x533   : > { %v1188_v22 = vpop.permute.xlu0 %1187  ;;  %v1140_v23 = vpop.permute.xlu1 %1139 }
 0x534   : > { %v1244_v25 = vmul.f32 %v1220_v21, %v1188_v22  ;;  %v1236_v27 = vmul.f32 %v1204_v1, %v1140_v23  ;;  %1267 = vst.msk [vmem:[%s3257_s17 + $0x30] sm:$0xff] %vm757_vm7, %v3499_v51 }
 0x536   : > { %v1252_v33 = vadd.f32 %v1236_v27, %v1033_v29  ;;  %v3507_v34 = vadd.f32 %v1244_v25, %v1041_v30 }
 0x537   : > { %v1148_v35 = vpop.permute.xlu1 %1147  ;;  %v1284_v49 = vpop.permute.xlu0 %1283 }
 0x538   : > { %v1237_v37 = vmul.f32 %v3411_v4, %v1148_v35  ;;  %1268 = vst.msk [vmem:[%s3257_s17 + $0x38] sm:$0xff] %vm757_vm7, %v1252_v33  ;;  %1276 = vst.msk [vmem:[%s3257_s17 + $0x78] sm:$0xff] %vm757_vm7, %v3507_v34 }
 0x53a   : > { %v1253_v16 = vadd.f32 %v1237_v37, %v1034_v5 }
 0x53b   : > { %v1160_v40 = vpop.permute.xlu1 %1159  ;;  %v1308_v56 = vpop.permute.xlu0 %1307 }
 0x53c   : > { %v1239_v45 = vmul.f32 %v3435_v9, %v1160_v40  ;;  %1269 = vst.msk [vmem:[%s3257_s17 + $0x40] sm:$0xff] %vm757_vm7, %v1253_v16  ;;  %v1348_v23 = vmul.f32 %v1308_v56, %v1252_v33  ;;  %v2097_v40 = vld [vmem:[%s3247_s2 + $0x16] ss:$0 sm:$0xff] }
 0x53e   : > { %v3519_v4 = vadd.f32 %v1239_v45, %v1036_v48  ;;  %v1385_v41 = vsel %vm757_vm7, %v1348_v23, 0.0 }
 0x53f   : > { %v1288_v52 = vpop.permute.xlu1 %1287  ;;  %v1316_v19 = vpop.permute.xlu0 %1315 }
 0x540   : > { %1271 = vst.msk [vmem:[%s3257_s17 + $0x50] sm:$0xff] %vm757_vm7, %v3519_v4  ;;  %v1343_v50 = vmul.f32 %v1288_v52, %v3418_v11  ;;  %v2436_v11 = vpop.eup %2435 }
 0x542   : > { %v1366_v61 = vsel %vm757_vm7, %v1343_v50, 0.0 }
 0x543   : > { %v1172_v54 = vpop.permute.xlu1 %1171  ;;  %v1368_v47 = vadd.f32 %v1367_v0, %v1366_v61  ;;  %v1324_v18 = vpop.permute.xlu0 %1323 }
 0x544   : > { %v1241_v9 = vmul.f32 %v3470_v55, %v1172_v54  ;;  %v886_v55 = vld [vmem:[%s3238_s25 + $0x70] sm:$0xff]  ;;  %v1352_v45 = vmul.f32 %v1324_v18, %v3457_v44  ;;  %v3559_v54 = vmul.f32 %v2097_v40, %v3312_v2 }
 0x545   : > { %v1040_v10 = vmul.f32 %v2436_v11, %v886_v55  ;;  %v1369_v14 = vrot.slane %v1368_v47, 4 }
 0x546   : > { %v3530_v60 = vadd.f32 %v1241_v9, %v1038_v39  ;;  %v1403_v39 = vsel %vm757_vm7, %v1352_v45, 0.0  ;;  %v1437_v2 = vrot.slane %v3559_v54, 2  ;;  %v1440_v40 = vrot.slane %v3559_v54, 5 }
 0x547   : > { %v1296_v62 = vpop.permute.xlu1 %1295  ;;  %v1370_v24 = vadd.f32 %v1369_v14, %v1368_v47  ;;  %v1332_v35 = vpop.permute.xlu0 %1331 }
 0x548   : > { %v1345_v63 = vmul.f32 %v1296_v62, %v3420_v12  ;;  %1273 = vst.msk [vmem:[%s3257_s17 + $0x60] sm:$0xff] %vm757_vm7, %v3530_v60  ;;  %v1342_v12 = vmul.f32 %v1284_v49, %v3486_v28  ;;  %v1354_v59 = vmul.f32 %v1332_v35, %v3488_v6 }
 0x549   : > { %v1371_v31 = vrot.slane %v1370_v24, 2 }
 0x54a   : > { %v1375_v42 = vsel %vm757_vm7, %v1345_v63, 0.0  ;;  %v1358_v22 = vsel %vm757_vm7, %v1342_v12, 0.0  ;;  %v1412_v6 = vsel %vm757_vm7, %v1354_v59, 0.0 }
 0x54b   : > { %v1377_v1 = vadd.f32 %v1376_v43, %v1375_v42  ;;  %v1184_v3 = vpop.permute.xlu1 %1183  ;;  %v1372_v53 = vadd.f32 %v1371_v31, %v1370_v24  ;;  %v1340_v56 = vpop.permute.xlu0 %1339  ;;  %v1438_v24 = vrot.slane %v3559_v54, 3 }
 0x54c   : > { %v1243_v7 = vmul.f32 %v1220_v21, %v1184_v3 }
 0x54d   : > { %v1378_v13 = vrot.slane %v1377_v1, 4  ;;  %v1373_v62 = vrot.slane %v1372_v53, 1 }
 0x54e   : > { %v3542_v15 = vadd.f32 %v1243_v7, %v1040_v10 }
 0x54f   : > { %v1280_v17 = vpop.permute.xlu1 %1279  ;;  %v1379_v8 = vadd.f32 %v1378_v13, %v1377_v1  ;;  %v1479_v7 = vpop.permute.xlu0 %1478  ;;  %v1374_v13 = vadd.f32 %v1373_v62, %v1372_v53 }
 0x550   : > { %v1341_v20 = vmul.f32 %v1280_v17, %v3474_v57  ;;  %1275 = vst.msk [vmem:[%s3257_s17 + $0x70] sm:$0xff] %vm757_vm7, %v3542_v15  ;;  %v1350_v57 = vmul.f32 %v1316_v19, %v3439_v26 }
 0x551   : > { %v1380_v27 = vrot.slane %v1379_v8, 2 }
 0x552   : > { %v1357_v21 = vsel %vm757_vm7, %v1341_v20, 0.0 }
 0x553   : > { %v1359_v25 = vadd.f32 %v1358_v22, %v1357_v21  ;;  %v1304_v28 = vpop.permute.xlu1 %1303  ;;  %v1381_v46 = vadd.f32 %v1380_v27, %v1379_v8 }
 0x554   : > { %v1347_v29 = vmul.f32 %v1304_v28, %v3499_v51  ;;  %v1394_v51 = vsel %vm757_vm7, %v1350_v57, 0.0 }
 0x555   : > { %v1360_v30 = vrot.slane %v1359_v25, 4  ;;  %v1382_v9 = vrot.slane %v1381_v46, 1 }
 0x556   : > { %v1384_v36 = vsel %vm757_vm7, %v1347_v29, 0.0 }
 0x557   : > { %v1361_v37 = vadd.f32 %v1360_v30, %v1359_v25  ;;  %v1386_v33 = vadd.f32 %v1385_v41, %v1384_v36  ;;  %v1312_v5 = vpop.permute.xlu1 %1311  ;;  %v1383_v19 = vadd.f32 %v1382_v9, %v1381_v46  ;;  %v1439_v9 = vrot.slane %v3559_v54, 4 }
 0x558   : > { %v1349_v38 = vmul.f32 %v1312_v5, %v1253_v16 }
 0x559   : > { %v1387_v48 = vrot.slane %v1386_v33, 4  ;;  %v1362_v49 = vrot.slane %v1361_v37, 2  ;;  %v1453_v22 = vadd.f32 %v1437_v2, %v1383_v19 }
 0x55a   : > { %v1393_v52 = vsel %vm757_vm7, %v1349_v38, 0.0 }
 0x55b   : > { %v1388_v26 = vadd.f32 %v1387_v48, %v1386_v33  ;;  %v1395_v32 = vadd.f32 %v1394_v51, %v1393_v52  ;;  %v1320_v50 = vpop.permute.xlu1 %1319  ;;  %v1363_v63 = vadd.f32 %v1362_v49, %v1361_v37  ;;  %v1500_v37 = vmul.f32 %v1479_v7, %v1453_v22 }
 0x55c   : > { %v1351_v16 = vmul.f32 %v1320_v50, %v3519_v4  ;;  %v1356_v4 = vmul.f32 %v1340_v56, %v3507_v34  ;;  %v1436_v34 = vrot.slane %v3559_v54, 1 }
 0x55d   : > { %v1389_v44 = vrot.slane %v1388_v26, 2  ;;  %v1396_v58 = vrot.slane %v1395_v32, 4  ;;  %v1364_v12 = vrot.slane %v1363_v63, 1  ;;  %v1516_v50 = vpack.c.bf16 %v1500_v37, %v1500_v37 }
 0x55e   : > { %v1402_v61 = vsel %vm757_vm7, %v1351_v16, 0.0  ;;  %v1421_v23 = vsel %vm757_vm7, %v1356_v4, 0.0  ;;  %v1452_v27 = vadd.f32 %v1436_v34, %v1374_v13 }
 0x55f   : > { %v1390_v11 = vadd.f32 %v1389_v44, %v1388_v26  ;;  %v1397_v0 = vadd.f32 %v1396_v58, %v1395_v32  ;;  %v1404_v55 = vadd.f32 %v1403_v39, %v1402_v61  ;;  %v1328_v43 = vpop.permute.xlu1 %1327  ;;  %v1365_v29 = vadd.f32 %v1364_v12, %v1363_v63 }
 0x560   : > { %v1353_v47 = vmul.f32 %v1328_v43, %v3530_v60  ;;  %v1441_v63 = vrot.slane %v3559_v54, 6  ;;  %v1532_v19 = vunpack.c.l.b16 %v1516_v50 }
 0x561   : > { %v1391_v42 = vrot.slane %v1390_v11, 1  ;;  %v1398_v1 = vrot.slane %v1397_v0, 2  ;;  %v1405_v3 = vrot.slane %v1404_v55, 4  ;;  %v1451_v48 = vadd.f32 %v3559_v54, %v1365_v29 }
 0x562   : > { %v1411_v10 = vsel %vm757_vm7, %v1353_v47, 0.0 }
 0x563   : > { %v1392_v14 = vadd.f32 %v1391_v42, %v1390_v11  ;;  %v1406_v17 = vadd.f32 %v1405_v3, %v1404_v55  ;;  %v1413_v18 = vadd.f32 %v1412_v6, %v1411_v10  ;;  %v1336_v8 = vpop.permute.xlu1 %1335  ;;  %v1399_v20 = vadd.f32 %v1398_v1, %v1397_v0 }
 0x564   : > { %v1355_v60 = vmul.f32 %v1336_v8, %v3542_v15  ;;  %v1481_v15 = vpop.permute.xlu0 %1480  ;;  %v1442_v6 = vrot.slane %v3559_v54, 7 }
 0x565   : > { %v1407_v21 = vrot.slane %v1406_v17, 2  ;;  %v1414_v25 = vrot.slane %v1413_v18, 4  ;;  %v1400_v30 = vrot.slane %v1399_v20, 1  ;;  %v1454_v41 = vadd.f32 %v1438_v24, %v1392_v14 }
 0x566   : > { %v1420_v28 = vsel %vm757_vm7, %v1355_v60, 0.0 }
 0x567   : > { %v1408_v57 = vadd.f32 %v1407_v21, %v1406_v17  ;;  %v1415_v31 = vadd.f32 %v1414_v25, %v1413_v18  ;;  %v1422_v35 = vadd.f32 %v1421_v23, %v1420_v28  ;;  %v1477_v36 = vpop.permute.xlu1 %1476  ;;  %v1401_v51 = vadd.f32 %v1400_v30, %v1399_v20 }
 0x568   : > { %v1499_v33 = vmul.f32 %v1477_v36, %v1452_v27  ;;  %v1501_v49 = vmul.f32 %v1481_v15, %v1454_v41  ;;  %v1485_v59 = vpop.permute.xlu0 %1484  ;;  %v1541_v18 = vrot.slane %v1532_v19, 6 }
 0x569   : > { %v1409_v5 = vrot.slane %v1408_v57, 1  ;;  %v1416_v46 = vrot.slane %v1415_v31, 2  ;;  %v1423_v38 = vrot.slane %v1422_v35, 4  ;;  %v1455_v62 = vadd.f32 %v1439_v9, %v1401_v51 }
 0x56a   : > { %v1515_v45 = vpack.c.bf16 %v1499_v33, %v1499_v33  ;;  %v1517_v11 = vpack.c.bf16 %v1501_v49, %v1501_v49 }
 0x56b   : > { %v1410_v52 = vadd.f32 %v1409_v5, %v1408_v57  ;;  %v1424_v53 = vadd.f32 %v1423_v38, %v1422_v35  ;;  %v1475_v26 = vpop.permute.xlu1 %1474  ;;  %v1417_v32 = vadd.f32 %v1416_v46, %v1415_v31 }
 0x56c   : > { %v1498_v56 = vmul.f32 %v1475_v26, %v1451_v48  ;;  %v1531_v44 = vunpack.c.l.b16 %v1515_v45  ;;  %v1533_v14 = vunpack.c.l.b16 %v1517_v11  ;;  %v1489_v60 = vpop.permute.xlu0 %1488 }
 0x56d   : > { %v1456_v16 = vadd.f32 %v1440_v40, %v1410_v52  ;;  %v1425_v39 = vrot.slane %v1424_v53, 2  ;;  %v1418_v58 = vrot.slane %v1417_v32, 1 }
 0x56e   : > { %v1514_v61 = vpack.c.bf16 %v1498_v56, %v1498_v56  ;;  %v1538_v1 = vrot.slane %v1531_v44, 7  ;;  %v1544_v25 = vrot.slane %v1533_v14, 5 }
 0x56f   : > { %v1503_v0 = vmul.f32 %v1485_v59, %v1456_v16  ;;  %v1426_v55 = vadd.f32 %v1425_v39, %v1424_v53  ;;  %v1483_v43 = vpop.permute.xlu1 %1482  ;;  %v1419_v2 = vadd.f32 %v1418_v58, %v1417_v32 }
 0x570   : > { %v1530_v47 = vunpack.c.l.b16 %v1514_v61  ;;  %v1502_v4 = vmul.f32 %v1483_v43, %v1455_v62 }
 0x571   : > { %v1427_v42 = vrot.slane %v1426_v55, 1  ;;  %v1457_v3 = vadd.f32 %v1441_v63, %v1419_v2  ;;  %v1519_v10 = vpack.c.bf16 %v1503_v0, %v1503_v0 }
 0x572   : > { %v1518_v7 = vpack.c.bf16 %v1502_v4, %v1502_v4  ;;  %v1540_v12 = vsel %vm1539_vm10, %v1538_v1, %v1530_v47 }
 0x573   : > { %v1428_v13 = vadd.f32 %v1427_v42, %v1426_v55  ;;  %v1487_v17 = vpop.permute.xlu1 %1486  ;;  %v1543_v34 = vsel %vm1542_vm11, %v1541_v18, %v1540_v12  ;;  %v1535_v54 = vunpack.c.l.b16 %v1519_v10 }
 0x574   : > { %v1534_v8 = vunpack.c.l.b16 %v1518_v7  ;;  %v1504_v20 = vmul.f32 %v1487_v17, %v1457_v3  ;;  %v1546_v29 = vsel %vm1545_vm12, %v1544_v25, %v1543_v34 }
 0x575   : > { %v1458_v22 = vadd.f32 %v1442_v6, %v1428_v13  ;;  %v1550_v31 = vrot.slane %v1535_v54, 3 }
 0x576   : > { %v1547_v23 = vrot.slane %v1534_v8, 4  ;;  %v1520_v24 = vpack.c.bf16 %v1504_v20, %v1504_v20 }
 0x577   : > { %v1505_v21 = vmul.f32 %v1489_v60, %v1458_v22 }
 0x578   : > { %v1536_v28 = vunpack.c.l.b16 %v1520_v24  ;;  %v1549_v30 = vsel %vm1548_vm13, %v1547_v23, %v1546_v29 }
 0x579   : > { %v1521_v27 = vpack.c.bf16 %v1505_v21, %v1505_v21  ;;  %v1552_v35 = vsel %vm1551_vm14, %v1550_v31, %v1549_v30 }
 0x57a   : > { %v1553_v41 = vrot.slane %v1536_v28, 2 }
 0x57b   : > { %v1537_v57 = vunpack.c.l.b16 %v1521_v27 }
 0x57c   : > { %v1555_v37 = vsel %vm1554_vm15, %v1553_v41, %v1552_v35 }
 0x57d   : > { %v1556_v36 = vrot.slane %v1537_v57, 1 }
 0x57f   : > { %v1558_v15 = vsel %vm1557_vm0, %v1556_v36, %v1555_v37 }
 0x580   : > { %v1559_v33 = vpack.c.b16 %v1558_v15, %v1558_v15 }
 0x582   : > { %2181 = vmatmul.mubr.msk.bf16.vlgmr.msra.gmra.mxu0 %vm757_vm7, %v1559_v33 }
 0x642   : > { %v1621_v5 = vpop.f32.mrf.mxu0 }
 0x643   : > { %1627 = vst.msk [vmem:[#allocation2] sm:$0xff] %vm639_vm5, %v1621_v5 }
 0x644   : > { %v2182_v46 = vpop.f32.mrf.mxu0  ;;  %1631 = sbr.rel (%p2104_p7) target bundleno = 2116 (0x844), region = 80 }
 0x646   : > { %v1624_v38 = vpop.f32.mrf.mxu0 }
 0x648   : > { %v2183_v40 = vpop.f32.mrf.mxu0 }
 0x649   : > { %v1632_v45 = vld [vmem:[#allocation3] sm:$0xff]  ;;  %v1662_v50 = vld [vmem:[#allocation13 + $0x18] sm:$0xff]  ;;  %v2836_v56 = vmov 0.0   ;;  %v1661_v9 = vld [vmem:[#allocation13 + $0x10] sm:$0xff]  ;;  %vm2837_vm1 = vmmov 0  }
 0x64a   : > { %v1633_v48 = vadd.f32 %v1632_v45, %v1621_v5  ;;  %2184 = vmatprep.subr.mxu0 %v2836_v56  ;;  %2192 = vmatprep.mubr.msk.f32.mxu0 %vm2837_vm1, %v2836_v56  ;;  %v1660_v16 = vld [vmem:[#allocation13 + $0x8] sm:$0xff]  ;;  %v1659_v39 = vld [vmem:[#allocation13] sm:$0xff] }
 0x64b   : > { %2185 = vmatpush3.msra.mxu0 %v1662_v50  ;;  %v2105_v62 = vld [vmem:[#allocation13 + $0x2e] ss:$0 sm:$0xff]  ;;  %v2106_v11 = vld [vmem:[#allocation13 + $0x2f] ss:$0 sm:$0xff]  ;;  %v2107_v43 = vld [vmem:[#allocation13 + $0x2d] ss:$0 sm:$0xff] }
 0x64c   : > { %v1636_v51 = vsel %vm639_vm5, %v1633_v48, 0.0  ;;  %2186 = vmatprep.subr.mxu0 %v2836_v56 }
 0x64d   : > { %1637 = vadd.xlane.f32.xlu0 %v1636_v51  ;;  %2187 = vmatpush3.msra.mxu0 %v1661_v9 }
 0x64e   : > { %2188 = vmatprep.subr.mxu0 %v2836_v56 }
 0x64f   : > { %2189 = vmatpush3.msra.mxu0 %v1660_v16 }
 0x650   : > { %2190 = vmatprep.subr.mxu0 %v2836_v56 }
 0x651   : > { %2191 = vmatpush3.msra.mxu0 %v1659_v39 }
 0x6d6   : > { %v1638_v49 = vpop.xlane.xlu0 %1637 }
 0x6d7   : > { %v1639_v52 = vmul.f32 0.03125, %v1638_v49 }
 0x6d9   : > { %v1640_v53 = vsub.f32 %v1633_v48, %v1639_v52 }
 0x6db   : > { %v1641_v26 = vmul.f32 %v1640_v53, %v1640_v53 }
 0x6dd   : > { %v1642_v32 = vsel %vm639_vm5, %v1641_v26, 0.0 }
 0x6de   : > { %1643 = vadd.xlane.f32.xlu0 %v1642_v32 }
 0x767   : > { %v1644_v44 = vpop.xlane.xlu0 %1643 }
 0x768   : > { %v1645_v58 = vmul.f32 0.03125, %v1644_v44 }
 0x76a   : > { %v1646_v59 = vadd.f32 1e-05, %v1645_v58 }
 0x76c   : > { %2437 = vrsqrt.f32 %v1646_v59 }
 0x779   : > { %v2438_v61 = vpop.eup %2437 }
 0x77a   : > { %v1648_v63 = vmul.f32 %v2438_v61, %v1640_v53 }
 0x77c   : > { %v1653_v0 = vmul.f32 %v2105_v62, %v1648_v63 }
 0x77e   : > { %v1658_v55 = vadd.f32 %v2106_v11, %v1653_v0 }
 0x780   : > { %2193 = vmatmul.mubr.msk.f32.vlgmr.msra.gmra.mxu0 %vm639_vm5, %v1658_v55 }
 0x840   : > { %v1737_v2 = vpop.f32.mrf.mxu0 }
 0x841   : > { %v1738_v19 = vadd.f32 %v2107_v43, %v1737_v2 }
 0x842   : > { %v2194_v47 = vpop.f32.mrf.mxu0 }
 0x843   : > { %1741 = vst [vmem:[%s3253_s0] sm:$0xff] %v1738_v19 }
 0x844 PF: > { %s3868_s6 = sld [smem:[#allocation31_spill]]  ;;  %s1780_s8 = sshll.u32 %s3255_s10, 4  ;;  %s3590_s8 = int_to_ptr.vmem [resolvable:$true] %s1780_s8 }
 0x845   : > { %s3869_s7 = sld [smem:[#allocation32_spill]]  ;;  %s1748_s14 = scalar_lea.sflag [#allocation17], %s3227_s23 }
 0x846   : > { %s3871_s29 = sld [smem:[#allocation55_spill]]  ;;  %s2605_s11 = scalar_lea.vmem %s3590_s8, 512 }
 0x847   : > { %p2606_p6 = scmp.ne.s32.totalorder %s3590_s8, %s2605_s11  ;;  %s2838_s28 = smov [#allocation16]  }
 0x848   : > { %s2609_s25 = sshll.u32 %s2838_s28, 4  ;;  %s2610_s25 = int_to_ptr.vmem [resolvable:$false] %s2609_s25 }
 0x849   : > { %p2607_p8 = pnand %p2606_p6, %p3152_p9  ;;  %s2611_s4 = scalar_lea.vmem %s2610_s25, 1024 }
 0x84a   : > { %s2113_s20 = sshll.u32 %s3868_s6, 3  ;;  %p2612_p11 = scmp.lt.s32.totalorder %s3590_s8, %s2610_s25 }
 0x84b   : > { %s1777_s9 = sadd.s32 %s3869_s7, %s2113_s20  ;;  %p2608_p3 = pneg %p2607_p8 }
 0x84c   : > { %s2114_s19 = sshll.u32 %s1777_s9, 7  ;;  %s3872_s5 = smov %s3871_s29 }
 0x84d   : > { %s3595_s30 = scalar_lea.hbm %s3871_s29, %s2114_s19  ;;  %p2613_p5 = scmp.lt.s32.totalorder %s2611_s4, %s2605_s11 }
 0x84f   : > { %p2614_p2 = por %p2613_p5, %p2612_p11 }
 0x851   : > { %p2615_p13 = pnand %p2614_p2, %p2608_p3 }
 0x853   : > { %2618 = shalt.err (!%p2615_p13)
}
 0x854   : > { %s2619_s3 = scalar_lea.hbm %s3595_s30, 512  ;;  %s2623_s10 = scalar_lea.hbm %s3872_s5, 2048 }
 0x855   : > { %p2620_p10 = scmp.ne.s32.totalorder %s3595_s30, %s2619_s3  ;;  %p2624_p1 = scmp.lt.s32.totalorder %s3595_s30, %s3872_s5 }
 0x856   : > { %p2625_p7 = scmp.lt.s32.totalorder %s2623_s10, %s2619_s3 }
 0x857   : > { %p2621_p12 = pnand %p2620_p10, %p3152_p9 }
 0x858   : > { %p2626_p6 = por %p2625_p7, %p2624_p1 }
 0x859   : > { %p2622_p0 = pneg %p2621_p12 }
 0x85b   : > { %p2627_p8 = pnand %p2626_p6, %p2622_p0 }
 0x85d   : > { %2630 = shalt.err (!%p2627_p8)
}
 0x85e   : > { %s2839_s15 = smov 128   ;;  %s2840_s20 = smov 256  }
 0x85f   : > { %s2841_s9 = smov 8   ;;  %s2112_s19 = sshll.u32 %s3869_s7, 7 }
 0x860   : > { %2213 = dma.vmem_to_hbm [thread:$0]  (%p3152_p9), %s3590_s8, 512, %s3595_s30, %s1748_s14, %s2839_s15, %s2840_s20, %s2841_s9  }
 0x861   : > { %s3874_s29 = sld [smem:[#allocation54_spill]]  ;;  %s1766_s28 = sshll.u32 %s3253_s0, 4  ;;  %s1767_s28 = int_to_ptr.vmem [resolvable:$true] %s1766_s28 }
 0x862   : > { %s2123_s4 = sshll.u32 %s3869_s7, 4  ;;  %s1743_s3 = scalar_lea.sflag [#allocation6], %s3216_s22 }
 0x863   : > { %s2631_s13 = scalar_lea.vmem %s1767_s28, 128  ;;  %s2842_s2 = smov [#allocation15]  }
 0x864   : > { %p2632_p3 = scmp.ne.s32.totalorder %s1767_s28, %s2631_s13  ;;  %s2635_s10 = sshll.u32 %s2842_s2, 4  ;;  %s2636_s10 = int_to_ptr.vmem [resolvable:$false] %s2635_s10 }
 0x865   : > { %s2637_s18 = scalar_lea.vmem %s2636_s10, 256  ;;  %p2638_p2 = scmp.lt.s32.totalorder %s1767_s28, %s2636_s10 }
 0x866   : > { %p2633_p11 = pnand %p2632_p3, %p3130_p4  ;;  %p2639_p13 = scmp.lt.s32.totalorder %s2637_s18, %s2631_s13 }
 0x867   : > { %s3875_s25 = smov %s3874_s29  ;;  %s3626_s11 = scalar_lea.hbm %s3874_s29, %s2112_s19 }
 0x868   : > { %p2634_p5 = pneg %p2633_p11  ;;  %p2640_p10 = por %p2639_p13, %p2638_p2 }
 0x86a   : > { %p2641_p12 = pnand %p2640_p10, %p2634_p5 }
 0x86c   : > { %2644 = shalt.err (!%p2641_p12)
}
 0x86d   : > { %s2645_s0 = scalar_lea.hbm %s3626_s11, 128  ;;  %s2649_s8 = scalar_lea.hbm %s3875_s25, 256 }
 0x86e   : > { %p2646_p0 = scmp.ne.s32.totalorder %s3626_s11, %s2645_s0  ;;  %p2650_p6 = scmp.lt.s32.totalorder %s3626_s11, %s3875_s25 }
 0x86f   : > { %p2651_p8 = scmp.lt.s32.totalorder %s2649_s8, %s2645_s0 }
 0x870   : > { %p2647_p1 = pnand %p2646_p0, %p3130_p4 }
 0x871   : > { %p2652_p3 = por %p2651_p8, %p2650_p6 }
 0x872   : > { %p2648_p7 = pneg %p2647_p1 }
 0x874   : > { %p2653_p11 = pnand %p2652_p3, %p2648_p7 }
 0x876   : > { %2656 = shalt.err (!%p2653_p11)
}
 0x877   : > { %2212 = dma.vmem_to_hbm [thread:$0]  (%p3130_p4), %s1767_s28, 128, %s3626_s11, %s1743_s3  }
 0x878   : > { %s2117_s20 = sshll.u32 %s3868_s6, 5  ;;  %s1799_s19 = sshll.u32 %s3257_s17, 4  ;;  %s3649_s19 = int_to_ptr.vmem [resolvable:$true] %s1799_s19 }
 0x879   : > { %s1796_s27 = sadd.s32 %s2123_s4, %s2117_s20  ;;  %s3876_s2 = sld [smem:[#allocation56_spill]] }
 0x87a   : > { %s2118_s26 = sshll.u32 %s1796_s27, 7  ;;  %s2657_s18 = scalar_lea.vmem %s3649_s19, 2048 }
 0x87b   : > { %p2658_p5 = scmp.ne.s32.totalorder %s3649_s19, %s2657_s18  ;;  %s2843_s21 = smov [#allocation18]  }
 0x87c   : > { %s2661_s11 = sshll.u32 %s2843_s21, 4  ;;  %s2662_s11 = int_to_ptr.vmem [resolvable:$false] %s2661_s11 }
 0x87d   : > { %p2659_p2 = pnand %p2658_p5, %p3152_p9  ;;  %s2663_s17 = scalar_lea.vmem %s2662_s11, 4096 }
 0x87e   : > { %p2664_p4 = scmp.lt.s32.totalorder %s3649_s19, %s2662_s11  ;;  %p2665_p10 = scmp.lt.s32.totalorder %s2663_s17, %s2657_s18 }
 0x87f   : > { %s1798_s10 = scalar_lea.hbm %s3876_s2, %s2118_s26  ;;  %p2660_p13 = pneg %p2659_p2 }
 0x880   : > { %p2666_p12 = por %p2665_p10, %p2664_p4 }
 0x882   : > { %p2667_p0 = pnand %p2666_p12, %p2660_p13 }
 0x884   : > { %2670 = shalt.err (!%p2667_p0)
}
 0x885   : > { %s2671_s6 = scalar_lea.hbm %s1798_s10, 2048  ;;  %s2675_s3 = scalar_lea.hbm %s3876_s2, 8192 }
 0x886   : > { %p2672_p1 = scmp.ne.s32.totalorder %s1798_s10, %s2671_s6  ;;  %p2676_p8 = scmp.lt.s32.totalorder %s1798_s10, %s3876_s2 }
 0x887   : > { %p2677_p3 = scmp.lt.s32.totalorder %s2675_s3, %s2671_s6 }
 0x888   : > { %p2673_p7 = pnand %p2672_p1, %p3152_p9 }
 0x889   : > { %p2678_p11 = por %p2677_p3, %p2676_p8 }
 0x88a   : > { %p2674_p6 = pneg %p2673_p7 }
 0x88c   : > { %p2679_p5 = pnand %p2678_p11, %p2674_p6 }
 0x88e   : > { %2682 = shalt.err (!%p2679_p5)
}
 0x88f   : > { %2214 = dma.vmem_to_hbm [thread:$0]  (%p3152_p9), %s3649_s19, 2048, %s1798_s10, %s1748_s14, %s2839_s15, %s2839_s15, %s2841_s9  }
 0x890 PF: > { %s3877_s7 = sld [smem:[#allocation34_spill]] }
 0x891   : > { %s3878_s8 = sld [smem:[#allocation29_spill]] }
 0x892   : > { %s3879_s30 = sld [smem:[#allocation45_spill]] }
 0x896   : > { %p2251_p2 = scmp.ge.s32.totalorder %s3877_s7, 2 }
 0x897   : > { %s1814_s24 = sand.u32 1, %s3878_s8  }
 0x898   : > { %p3880_p13 = scmp.ne.s32.totalorder %s3879_s30, 0  ;;  %s1815_s20 = scalar_lea.sflag [#allocation6], %s1814_s24 }
 0x89a   : > { %p2239_p4 = pnand %p2251_p2, %p3880_p13 }
 0x89c   : > { %p2240_p10 = pneg %p2239_p4 }
 0x89e   : > { %2756 = dma.done.wait (%p2240_p10), %s1815_s20, 128  }
 0x89f   : > { %2758 = vsyncadd (%p2240_p10), %s1815_s20, 4294967168  ;;  %s3881_s1 = sadd.s32 4294967294, %s3877_s7   ;;  %s3882_s27 = sld [smem:[#allocation47_spill]] }
 0x8a0   : > { %s1823_s26 = sand.u32 1, %s3881_s1  }
 0x8a1   : > { %s1824_s23 = scalar_lea.sflag [#allocation17], %s1823_s26 }
 0x8a5   : > { %p3883_p12 = scmp.ne.s32.totalorder %s3882_s27, 0 }
 0x8a7   : > { %p2242_p0 = pnand %p2251_p2, %p3883_p12 }
 0x8a9   : > { %p2243_p1 = pneg %p2242_p0 }
 0x8ab   : > { %2760 = dma.done.wait (%p2243_p1), %s1824_s23, 2560  }
 0x8ac   : > { %2762 = vsyncadd (%p2243_p1), %s1824_s23, 4294964736  ;;  %s35_s18 = sadd.s32 1, %s3877_s7   ;;  %s3885_s27 = sld [smem:[#allocation25_spill]] }
 0x8ad   : > { %p3684_p9 = scmp.ge.s32.totalorder %s35_s18, 6   ;;  %s3886_s28 = sld [smem:[#allocation26_spill]] }
 0x8ae   : > { %s3887_s29 = sld [smem:[#allocation38_spill]]  ;;  %s3897_s11 = smov %s2793_s12 }
 0x8af   : > { %s3888_s30 = sld [smem:[#allocation27_spill]]  ;;  %s3899_s14 = smov %s2809_s16 }
 0x8b0   : > { %s3889_s9 = sld [smem:[#allocation28_spill]] }
 0x8b1   : > { %s3890_s10 = sld [smem:[#allocation44_spill]] }
 0x8b2   : > { %s3891_s15 = sld [smem:[#allocation30_spill]] }
 0x8b3   : > { %s3892_s13 = sld [smem:[#allocation43_spill]] }
 0x8b4   : > { %s3893_s19 = sld [smem:[#allocation33_spill]] }
 0x8b5   : > { %s3894_s21 = sld [smem:[#allocation37_spill]] }
 0x8b6   : > { %s3895_s17 = sld [smem:[#allocation40_spill]] }
 0x8b7   :  { %34 = sbr.rel (!%p3684_p9) target bundleno = 27 (0x1b), region = 186 }
 0x8b8   : > { %s3898_s12 = smov %s3891_s15 }
 0x8ba   : > { %s3900_s15 = smov %s3893_s19 }
 0x8bb   : > { %s3901_s16 = smov %s3894_s21 }
 0x8bc   :  { %1838 = vsyncpa [#allocation5], 1 }
 0x8bd   :  { %1840 = vsyncpa [#allocation5 + $0x1], 1 }
 0x8be   :  { %1841 = vsyncpa [#allocation8], 1 }
 0x8bf   :  { %1843 = vsyncpa [#allocation8 + $0x1], 1 }
 0x8c0   :  { %1844 = vsyncpa [#allocation11], 1 }
 0x8c1   :  { %1846 = vsyncpa [#allocation11 + $0x1], 1 }
 0x8c2   :  { %1847 = vsyncpa [#allocation14], 1 }
 0x8c3   :  { %1848 = vsyncpa [#allocation6], 1 }
 0x8c4   :  { %1850 = vsyncpa [#allocation6 + $0x1], 1 }
 0x8c5   :  { %1851 = vsyncpa [#allocation17], 1 }
 0x8c6   :  { %1853 = vsyncpa [#allocation17 + $0x1], 1 }

</bundles_post_ra>
